<compile_context>
chip_gen: v6e
topology: v6e:2x2x1
jax: 0.10.0
libtpu: 0.0.40
codegen_flags: <defaults>
</compile_context>

<pallas_src>
import math

import jax
import jax.numpy as jnp
from jax.experimental import pallas as pl
from jax.experimental.pallas import tpu as pltpu

# ----------------- small synthetic Mistral config -----------------
B, S = 2, 8          # batch, sequence length
D = 128              # hidden size
H = 4                # attention heads
HD = D // H          # head dim
FFN = 256            # MLP intermediate size
VOCAB = 64
LAYERS = 2
LORA_R = 8
LORA_ALPHA = 16
LORA_SCALE = LORA_ALPHA / LORA_R
EPS = 1e-6
NEG = -1e9


# ----------------- fused whole-forward Pallas kernel -----------------
def _encoder_kernel(x_ref, mask_ref, cos_ref, sin_ref,
                    ln1_ref, ln2_ref, lnf_ref,
                    wqkv_ref, wo_ref, wgu_ref, wd_ref,
                    o_ref):
    x = x_ref[...]                        # [S, D] f32 residual stream
    m = mask_ref[...]                     # [S, 1] f32 (1 = real token)
    bias = (1.0 - m) * NEG                # [S, 1] additive KEY mask, sublane layout
    cos = cos_ref[...]                    # [S, D] f32 (per-head table tiled over heads)
    sin = sin_ref[...]                    # [S, D] f32
    scale = 1.0 / math.sqrt(HD)

    def rmsnorm(t, g):
        var = jnp.mean(t * t, axis=-1, keepdims=True)
        return t * jax.lax.rsqrt(var + EPS) * g

    for li in range(LAYERS):              # fully unrolled; weights stay in VMEM
        # ---- attention block: ln1 -> fused QKV(+pre-rotated Q/K) -> attn -> o-proj + residual
        hn = rmsnorm(x, ln1_ref[li]).astype(jnp.bfloat16)
        qkv = jnp.dot(hn, wqkv_ref[li], preferred_element_type=jnp.float32)   # [S, 5D]
        # RoPE: rotate_half was folded into the Wq@R / Wk@R weight columns at init,
        # so this is pure lane-dense element-wise work (no per-head shuffles).
        q = qkv[:, 0 * D:1 * D] * cos + qkv[:, 1 * D:2 * D] * sin             # [S, D]
        k = qkv[:, 2 * D:3 * D] * cos + qkv[:, 3 * D:4 * D] * sin             # [S, D]
        v = qkv[:, 4 * D:5 * D]                                               # [S, D]

        wo = wo_ref[li]                                                       # [D, D] bf16
        acc = x                                                               # residual
        for h in range(H):                # H=4; o-proj folded in -> no lane concatenate
            qh = q[:, h * HD:(h + 1) * HD].astype(jnp.bfloat16)
            kh = k[:, h * HD:(h + 1) * HD].astype(jnp.bfloat16)
            vh = v[:, h * HD:(h + 1) * HD].astype(jnp.bfloat16)
            # transposed scores [S_k, S_q]: keys live on sublanes so the [S,1]
            # key mask broadcasts directly (no lane-width-8 bias tensor).
            st = jax.lax.dot_general(kh, qh, (((1,), (1,)), ((), ())),
                                     preferred_element_type=jnp.float32)
            st = st * scale + bias
            # bidirectional (non-causal) attention, softmax over the key axis
            st = st - jnp.max(st, axis=0, keepdims=True)
            p = jnp.exp(st)
            p = p * pl.reciprocal(jnp.sum(p, axis=0, keepdims=True), approx=True)
            ho = jax.lax.dot_general(p.astype(jnp.bfloat16), vh,
                                     (((0,), (0,)), ((), ())),
                                     preferred_element_type=jnp.float32)      # [S_q, HD]
            acc = acc + jnp.dot(ho.astype(jnp.bfloat16),
                                wo[h * HD:(h + 1) * HD, :],
                                preferred_element_type=jnp.float32)
        x = acc

        # ---- MLP block: ln2 -> fused gate/up -> SwiGLU -> down-proj + residual
        hn2 = rmsnorm(x, ln2_ref[li]).astype(jnp.bfloat16)
        gu = jnp.dot(hn2, wgu_ref[li], preferred_element_type=jnp.float32)    # [S, 2*FFN]
        g = gu[:, :FFN]
        u = gu[:, FFN:]
        f = (g * jax.nn.sigmoid(g) * u).astype(jnp.bfloat16)
        x = x + jnp.dot(f, wd_ref[li], preferred_element_type=jnp.float32)

    # ---- final RMSNorm + masked mean pooling (exact divide; clamped denominator)
    hn = rmsnorm(x, lnf_ref[...])                                             # [S, D]
    summed = jnp.sum(hn * m, axis=0, keepdims=True)                           # [1, D]
    denom = jnp.maximum(jnp.sum(m, axis=0, keepdims=True), 1e-9)
    o_ref[...] = summed / denom


def encoding_model_forward(params, input_ids, attention_mask):
    # TODO(synk): embedding gather stays in JAX (data-dependent gather).
    x = jnp.take(params["embed"], input_ids, axis=0)                          # [B, S, D]
    mask = attention_mask.astype(jnp.float32)[:, :, None]                     # [B, S, 1]

    in_specs = [
        pl.BlockSpec((None, S, D), lambda b: (b, 0, 0)),            # x (per-batch)
        pl.BlockSpec((None, S, 1), lambda b: (b, 0, 0)),            # mask (per-batch)
        pl.BlockSpec((S, D), lambda b: (0, 0)),                     # rope cos
        pl.BlockSpec((S, D), lambda b: (0, 0)),                     # rope sin
        pl.BlockSpec((LAYERS, 1, D), lambda b: (0, 0, 0)),          # ln1
        pl.BlockSpec((LAYERS, 1, D), lambda b: (0, 0, 0)),          # ln2
        pl.BlockSpec((1, D), lambda b: (0, 0)),                     # ln_f
        pl.BlockSpec((LAYERS, D, 5 * D), lambda b: (0, 0, 0)),      # fused QKV(+rot)
        pl.BlockSpec((LAYERS, D, D), lambda b: (0, 0, 0)),          # o-proj
        pl.BlockSpec((LAYERS, D, 2 * FFN), lambda b: (0, 0, 0)),    # fused gate/up
        pl.BlockSpec((LAYERS, FFN, D), lambda b: (0, 0, 0)),        # down-proj
    ]
    out = pl.pallas_call(
        _encoder_kernel,
        grid=(B,),
        in_specs=in_specs,
        out_specs=pl.BlockSpec((None, 1, D), lambda b: (b, 0, 0)),
        out_shape=jax.ShapeDtypeStruct((B, 1, D), jnp.float32),
        compiler_params=pltpu.CompilerParams(
            dimension_semantics=("parallel",)),   # one sequence per TC on v7x
    )(x, mask, params["rope_cos"], params["rope_sin"],
      params["ln1"], params["ln2"], params["ln_f"],
      params["wqkv"], params["wo"], params["wgu"], params["wd"])
    return out.reshape(B, D)


# ----------------- deterministic parameter init -----------------
def _rope_tables():
    inv_freq = 1.0 / (10000.0 ** (jnp.arange(0, HD, 2, dtype=jnp.float32) / HD))
    pos = jnp.arange(S, dtype=jnp.float32)
    freqs = pos[:, None] * inv_freq[None, :]                 # [S, HD/2]
    emb = jnp.concatenate([freqs, freqs], axis=-1)           # [S, HD]
    cos_h, sin_h = jnp.cos(emb), jnp.sin(emb)
    # tile the per-head table across the H concatenated heads -> lane-dense [S, D]
    return jnp.tile(cos_h, (1, H)), jnp.tile(sin_h, (1, H))


def _rotate_half_matrix():
    # per-head rotate_half as a signed permutation matrix R: q @ R == rotate_half(q)
    half = HD // 2
    eye = jnp.eye(half, dtype=jnp.float32)
    zero = jnp.zeros((half, half), dtype=jnp.float32)
    r_head = jnp.block([[zero, eye], [-eye, zero]])          # [HD, HD]
    return jnp.kron(jnp.eye(H, dtype=jnp.float32), r_head)   # [D, D] block-diagonal


def init_params(key):
    def nrm(k, shape, s=0.02):
        return jax.random.normal(k, shape, dtype=jnp.float32) * s

    def merged(k, din, dout):
        # LoRA folded offline: W_eff = W + scale * A @ B.  The fresh peft adapter's
        # B is zero-initialized, so W_eff == W numerically (matches merge_peft=True
        # on the pretrained adapter followed by a fresh LoRA).
        kw, ka = jax.random.split(k)
        w = nrm(kw, (din, dout))
        a = nrm(ka, (din, LORA_R))
        b_ = jnp.zeros((LORA_R, dout), jnp.float32)
        return w + LORA_SCALE * (a @ b_)

    keys = jax.random.split(key, 1 + LAYERS)
    cos, sin = _rope_tables()
    rot = _rotate_half_matrix()
    wqkv, wo, wgu, wd = [], [], [], []
    for li in range(LAYERS):
        lk = jax.random.split(keys[1 + li], 7)
        wq = merged(lk[0], D, D)
        wk = merged(lk[1], D, D)
        wv = merged(lk[2], D, D)
        # fused projection [Wq | Wq@R | Wk | Wk@R | Wv]: RoPE's rotate-half becomes
        # pure element-wise work in the kernel (R is an exact signed permutation).
        wqkv.append(jnp.concatenate([wq, wq @ rot, wk, wk @ rot, wv], axis=1))
        wo.append(merged(lk[3], D, D))
        wgu.append(jnp.concatenate([merged(lk[4], D, FFN), merged(lk[5], D, FFN)], axis=1))
        wd.append(merged(lk[6], FFN, D))
    return {
        "embed": nrm(keys[0], (VOCAB, D)),
        "rope_cos": cos, "rope_sin": sin,
        "ln1": jnp.ones((LAYERS, 1, D), jnp.float32),
        "ln2": jnp.ones((LAYERS, 1, D), jnp.float32),
        "ln_f": jnp.ones((1, D), jnp.float32),
        "wqkv": jnp.stack(wqkv).astype(jnp.bfloat16),        # [L, D, 5D]
        "wo": jnp.stack(wo).astype(jnp.bfloat16),            # [L, D, D]
        "wgu": jnp.stack(wgu).astype(jnp.bfloat16),          # [L, D, 2*FFN]
        "wd": jnp.stack(wd).astype(jnp.bfloat16),            # [L, FFN, D]
    }


# ----------------- pure-JAX reference (same bf16 compute semantics) -----------------
def reference_forward(params, input_ids, attention_mask):
    x = jnp.take(params["embed"], input_ids, axis=0)                          # [B, S, D]
    maskf = attention_mask.astype(jnp.float32)
    bias = (1.0 - maskf)[:, None, None, :] * NEG                              # [B,1,1,S]
    cos_h = params["rope_cos"][:, :HD]
    sin_h = params["rope_sin"][:, :HD]
    scale = 1.0 / math.sqrt(HD)

    def rms(t, g):
        return t * jax.lax.rsqrt(jnp.mean(t * t, axis=-1, keepdims=True) + EPS) * g

    def rope_ref(t):                      # t: [B, S, H, HD]
        t1, t2 = t[..., :HD // 2], t[..., HD // 2:]
        rot = jnp.concatenate([-t2, t1], axis=-1)
        return t * cos_h[None, :, None, :] + rot * sin_h[None, :, None, :]

    for li in range(LAYERS):
        wfull = params["wqkv"][li]
        wq, wk, wv = wfull[:, :D], wfull[:, 2 * D:3 * D], wfull[:, 4 * D:]
        hn = rms(x, params["ln1"][li]).astype(jnp.bfloat16)
        q = jnp.einsum("bsd,de->bse", hn, wq, preferred_element_type=jnp.float32)
        k = jnp.einsum("bsd,de->bse", hn, wk, preferred_element_type=jnp.float32)
        v = jnp.einsum("bsd,de->bse", hn, wv, preferred_element_type=jnp.float32)
        q = rope_ref(q.reshape(B, S, H, HD))
        k = rope_ref(k.reshape(B, S, H, HD))
        v = v.reshape(B, S, H, HD)
        s = jnp.einsum("bqhd,bkhd->bhqk", q.astype(jnp.bfloat16), k.astype(jnp.bfloat16),
                       preferred_element_type=jnp.float32) * scale + bias
        p = jax.nn.softmax(s, axis=-1)
        ao = jnp.einsum("bhqk,bkhd->bqhd", p.astype(jnp.bfloat16), v.astype(jnp.bfloat16),
                        preferred_element_type=jnp.float32).reshape(B, S, D)
        x = x + jnp.einsum("bsd,de->bse", ao.astype(jnp.bfloat16), params["wo"][li],
                           preferred_element_type=jnp.float32)
        hn2 = rms(x, params["ln2"][li]).astype(jnp.bfloat16)
        gu = jnp.einsum("bsd,de->bse", hn2, params["wgu"][li],
                        preferred_element_type=jnp.float32)
        g, u = gu[..., :FFN], gu[..., FFN:]
        f = (g * jax.nn.sigmoid(g) * u).astype(jnp.bfloat16)
        x = x + jnp.einsum("bsf,fd->bsd", f, params["wd"][li],
                           preferred_element_type=jnp.float32)

    hn = rms(x, params["ln_f"])
    m = maskf[:, :, None]
    return jnp.sum(hn * m, axis=1) / jnp.maximum(jnp.sum(m, axis=1), 1e-9)


if __name__ == "__main__":
    key = jax.random.PRNGKey(0)
    pkey, ikey = jax.random.split(key)
    params = init_params(pkey)

    # TODO(synk): tokenizer + pretrained/PEFT checkpoint loading have no Pallas
    # equivalent; synthetic token ids + attention mask (2nd sequence is padded).
    input_ids = jax.random.randint(ikey, (B, S), 0, VOCAB, dtype=jnp.int32)
    attention_mask = jnp.array(
        [[1, 1, 1, 1, 1, 1, 1, 1],
         [1, 1, 1, 1, 1, 1, 0, 0]], dtype=jnp.int32)

    fwd = jax.jit(encoding_model_forward)
    emb = jax.block_until_ready(fwd(params, input_ids, attention_mask))
    assert emb.shape == (B, D) and emb.dtype == jnp.float32
    assert bool(jnp.all(jnp.isfinite(emb)))

    ref = jax.block_until_ready(jax.jit(reference_forward)(params, input_ids, attention_mask))
    max_err = float(jnp.max(jnp.abs(emb - ref)))
    assert max_err < 2e-2, f"kernel vs reference mismatch: max abs err = {max_err}"

    print("KERNEL_OK")
</pallas_src>

<mosaic_0001>
module attributes {stable_mosaic.version = 11 : i64} {
  func.func @_encoder_kernel(%arg0: i32, %arg1: memref<1x8x128xf32, #tpu.memory_space<vmem>>, %arg2: memref<1x8x1xf32, #tpu.memory_space<vmem>>, %arg3: memref<8x128xf32, #tpu.memory_space<vmem>>, %arg4: memref<8x128xf32, #tpu.memory_space<vmem>>, %arg5: memref<2x1x128xf32, #tpu.memory_space<vmem>>, %arg6: memref<2x1x128xf32, #tpu.memory_space<vmem>>, %arg7: memref<1x128xf32, #tpu.memory_space<vmem>>, %arg8: memref<2x128x640xbf16, #tpu.memory_space<vmem>>, %arg9: memref<2x128x128xbf16, #tpu.memory_space<vmem>>, %arg10: memref<2x128x512xbf16, #tpu.memory_space<vmem>>, %arg11: memref<2x256x128xbf16, #tpu.memory_space<vmem>>, %arg12: memref<1x1x128xf32, #tpu.memory_space<vmem>>) attributes {dimension_semantics = [#tpu.dimension_semantics<parallel>], iteration_bounds = array<i64: 2>, scalar_prefetch = 0 : i64, scratch_operands = 0 : i64, tpu.core_type = #tpu.core_type<tc>, window_params = [{transform_indices = @transform_0, window_bounds = array<i64: 1, 8, 128>}, {transform_indices = @transform_1, window_bounds = array<i64: 1, 8, 1>}, {pipeline_mode = #tpu.pipeline_mode<synchronous>, transform_indices = @transform_2, window_bounds = array<i64: 8, 128>}, {pipeline_mode = #tpu.pipeline_mode<synchronous>, transform_indices = @transform_3, window_bounds = array<i64: 8, 128>}, {pipeline_mode = #tpu.pipeline_mode<synchronous>, transform_indices = @transform_4, window_bounds = array<i64: 2, 1, 128>}, {pipeline_mode = #tpu.pipeline_mode<synchronous>, transform_indices = @transform_5, window_bounds = array<i64: 2, 1, 128>}, {pipeline_mode = #tpu.pipeline_mode<synchronous>, transform_indices = @transform_6, window_bounds = array<i64: 1, 128>}, {pipeline_mode = #tpu.pipeline_mode<synchronous>, transform_indices = @transform_7, window_bounds = array<i64: 2, 128, 640>}, {pipeline_mode = #tpu.pipeline_mode<synchronous>, transform_indices = @transform_8, window_bounds = array<i64: 2, 128, 128>}, {pipeline_mode = #tpu.pipeline_mode<synchronous>, transform_indices = @transform_9, window_bounds = array<i64: 2, 128, 512>}, {pipeline_mode = #tpu.pipeline_mode<synchronous>, transform_indices = @transform_10, window_bounds = array<i64: 2, 256, 128>}, {transform_indices = @transform_11, window_bounds = array<i64: 1, 1, 128>}]} {
    %c0 = arith.constant 0 : index
    %c0_0 = arith.constant 0 : index
    %c0_1 = arith.constant 0 : index
    %0 = vector.load %arg1[%c0, %c0_0, %c0_1] : memref<1x8x128xf32, #tpu.memory_space<vmem>>, vector<1x8x128xf32>
    %1 = vector.shape_cast %0 : vector<1x8x128xf32> to vector<8x128xf32>
    %c0_2 = arith.constant 0 : index
    %c0_3 = arith.constant 0 : index
    %c0_4 = arith.constant 0 : index
    %2 = vector.load %arg2[%c0_2, %c0_3, %c0_4] : memref<1x8x1xf32, #tpu.memory_space<vmem>>, vector<1x8x1xf32>
    %3 = vector.shape_cast %2 : vector<1x8x1xf32> to vector<8x1xf32>
    %cst = arith.constant 1.000000e+00 : f32
    %4 = vector.broadcast %cst : f32 to vector<8x1xf32>
    %5 = arith.subf %4, %3 : vector<8x1xf32>
    %cst_5 = arith.constant -1.000000e+09 : f32
    %6 = vector.broadcast %cst_5 : f32 to vector<8x1xf32>
    %7 = arith.mulf %5, %6 : vector<8x1xf32>
    %c0_6 = arith.constant 0 : index
    %c0_7 = arith.constant 0 : index
    %8 = vector.load %arg3[%c0_6, %c0_7] : memref<8x128xf32, #tpu.memory_space<vmem>>, vector<8x128xf32>
    %c0_8 = arith.constant 0 : index
    %c0_9 = arith.constant 0 : index
    %9 = vector.load %arg4[%c0_8, %c0_9] : memref<8x128xf32, #tpu.memory_space<vmem>>, vector<8x128xf32>
    %c0_10 = arith.constant 0 : index
    %c0_11 = arith.constant 0 : index
    %c0_12 = arith.constant 0 : index
    %10 = vector.load %arg5[%c0_10, %c0_11, %c0_12] : memref<2x1x128xf32, #tpu.memory_space<vmem>>, vector<1x1x128xf32>
    %11 = vector.shape_cast %10 : vector<1x1x128xf32> to vector<1x128xf32>
    %12 = arith.mulf %1, %1 : vector<8x128xf32>
    %cst_13 = arith.constant dense<0.000000e+00> : vector<8xf32>
    %13 = vector.multi_reduction <add>, %12, %cst_13 [1] : vector<8x128xf32> to vector<8xf32>
    %14 = vector.shape_cast %13 : vector<8xf32> to vector<8x1xf32>
    %cst_14 = arith.constant 1.280000e+02 : f32
    %15 = vector.broadcast %cst_14 : f32 to vector<8x1xf32>
    %16 = arith.divf %14, %15 : vector<8x1xf32>
    %cst_15 = arith.constant 9.99999997E-7 : f32
    %17 = vector.broadcast %cst_15 : f32 to vector<8x1xf32>
    %18 = arith.addf %16, %17 : vector<8x1xf32>
    %19 = math.rsqrt %18 : vector<8x1xf32>
    %20 = vector.broadcast %19 : vector<8x1xf32> to vector<8x128xf32>
    %21 = arith.mulf %1, %20 : vector<8x128xf32>
    %22 = vector.broadcast %11 : vector<1x128xf32> to vector<8x128xf32>
    %23 = arith.mulf %21, %22 : vector<8x128xf32>
    %24 = arith.truncf %23 : vector<8x128xf32> to vector<8x128xbf16>
    %c0_16 = arith.constant 0 : index
    %c0_17 = arith.constant 0 : index
    %c0_18 = arith.constant 0 : index
    %25 = vector.load %arg8[%c0_16, %c0_17, %c0_18] : memref<2x128x640xbf16, #tpu.memory_space<vmem>>, vector<1x128x640xbf16>
    %26 = vector.shape_cast %25 : vector<1x128x640xbf16> to vector<128x640xbf16>
    %cst_19 = arith.constant dense<0.000000e+00> : vector<8x640xf32>
    %27 = tpu.matmul %24, %26, %cst_19 {dimension_numbers = #tpu.dot_dimension_numbers<[1], [0], [0], [1], [0, 0, 1, 1], [], []>} : vector<8x128xbf16>, vector<128x640xbf16>, vector<8x640xf32> -> vector<8x640xf32>
    %28 = vector.extract_strided_slice %27 {offsets = [0, 0], sizes = [8, 128], strides = [1, 1]} : vector<8x640xf32> to vector<8x128xf32>
    %29 = arith.mulf %28, %8 : vector<8x128xf32>
    %30 = vector.extract_strided_slice %27 {offsets = [0, 128], sizes = [8, 128], strides = [1, 1]} : vector<8x640xf32> to vector<8x128xf32>
    %31 = arith.mulf %30, %9 : vector<8x128xf32>
    %32 = arith.addf %29, %31 : vector<8x128xf32>
    %33 = vector.extract_strided_slice %27 {offsets = [0, 256], sizes = [8, 128], strides = [1, 1]} : vector<8x640xf32> to vector<8x128xf32>
    %34 = arith.mulf %33, %8 : vector<8x128xf32>
    %35 = vector.extract_strided_slice %27 {offsets = [0, 384], sizes = [8, 128], strides = [1, 1]} : vector<8x640xf32> to vector<8x128xf32>
    %36 = arith.mulf %35, %9 : vector<8x128xf32>
    %37 = arith.addf %34, %36 : vector<8x128xf32>
    %38 = vector.extract_strided_slice %27 {offsets = [0, 512], sizes = [8, 128], strides = [1, 1]} : vector<8x640xf32> to vector<8x128xf32>
    %c0_20 = arith.constant 0 : index
    %c0_21 = arith.constant 0 : index
    %c0_22 = arith.constant 0 : index
    %39 = vector.load %arg9[%c0_20, %c0_21, %c0_22] : memref<2x128x128xbf16, #tpu.memory_space<vmem>>, vector<1x128x128xbf16>
    %40 = vector.shape_cast %39 : vector<1x128x128xbf16> to vector<128x128xbf16>
    %41 = vector.extract_strided_slice %32 {offsets = [0, 0], sizes = [8, 32], strides = [1, 1]} : vector<8x128xf32> to vector<8x32xf32>
    %42 = arith.truncf %41 : vector<8x32xf32> to vector<8x32xbf16>
    %43 = vector.extract_strided_slice %37 {offsets = [0, 0], sizes = [8, 32], strides = [1, 1]} : vector<8x128xf32> to vector<8x32xf32>
    %44 = arith.truncf %43 : vector<8x32xf32> to vector<8x32xbf16>
    %45 = vector.extract_strided_slice %38 {offsets = [0, 0], sizes = [8, 32], strides = [1, 1]} : vector<8x128xf32> to vector<8x32xf32>
    %46 = arith.truncf %45 : vector<8x32xf32> to vector<8x32xbf16>
    %cst_23 = arith.constant dense<0.000000e+00> : vector<8x8xf32>
    %47 = tpu.matmul %44, %42, %cst_23 {dimension_numbers = #tpu.dot_dimension_numbers<[1], [1], [0], [0], [0, 0, 1, 0], [], []>} : vector<8x32xbf16>, vector<8x32xbf16>, vector<8x8xf32> -> vector<8x8xf32>
    %cst_24 = arith.constant 0.176776692 : f32
    %48 = vector.broadcast %cst_24 : f32 to vector<8x8xf32>
    %49 = arith.mulf %47, %48 : vector<8x8xf32>
    %50 = vector.broadcast %7 : vector<8x1xf32> to vector<8x8xf32>
    %51 = arith.addf %49, %50 : vector<8x8xf32>
    %cst_25 = arith.constant dense<0xFF800000> : vector<8xf32>
    %52 = vector.multi_reduction <maximumf>, %51, %cst_25 [0] : vector<8x8xf32> to vector<8xf32>
    %53 = vector.shape_cast %52 : vector<8xf32> to vector<1x8xf32>
    %54 = vector.broadcast %53 : vector<1x8xf32> to vector<8x8xf32>
    %55 = arith.subf %51, %54 : vector<8x8xf32>
    %56 = math.exp %55 : vector<8x8xf32>
    %cst_26 = arith.constant dense<0.000000e+00> : vector<8xf32>
    %57 = vector.multi_reduction <add>, %56, %cst_26 [0] : vector<8x8xf32> to vector<8xf32>
    %58 = vector.shape_cast %57 : vector<8xf32> to vector<1x8xf32>
    %59 = tpu.reciprocal %58 {approx = true} : vector<1x8xf32> -> vector<1x8xf32>
    %60 = vector.broadcast %59 : vector<1x8xf32> to vector<8x8xf32>
    %61 = arith.mulf %56, %60 : vector<8x8xf32>
    %62 = arith.truncf %61 : vector<8x8xf32> to vector<8x8xbf16>
    %cst_27 = arith.constant dense<0.000000e+00> : vector<8x32xf32>
    %63 = tpu.matmul %62, %46, %cst_27 {dimension_numbers = #tpu.dot_dimension_numbers<[0], [0], [1], [1], [0, 1, 1, 1], [], []>} : vector<8x8xbf16>, vector<8x32xbf16>, vector<8x32xf32> -> vector<8x32xf32>
    %64 = arith.truncf %63 : vector<8x32xf32> to vector<8x32xbf16>
    %65 = vector.extract_strided_slice %40 {offsets = [0, 0], sizes = [32, 128], strides = [1, 1]} : vector<128x128xbf16> to vector<32x128xbf16>
    %cst_28 = arith.constant dense<0.000000e+00> : vector<8x128xf32>
    %66 = tpu.matmul %64, %65, %cst_28 {dimension_numbers = #tpu.dot_dimension_numbers<[1], [0], [0], [1], [0, 0, 1, 1], [], []>} : vector<8x32xbf16>, vector<32x128xbf16>, vector<8x128xf32> -> vector<8x128xf32>
    %67 = arith.addf %1, %66 : vector<8x128xf32>
    %68 = vector.extract_strided_slice %32 {offsets = [0, 32], sizes = [8, 32], strides = [1, 1]} : vector<8x128xf32> to vector<8x32xf32>
    %69 = arith.truncf %68 : vector<8x32xf32> to vector<8x32xbf16>
    %70 = vector.extract_strided_slice %37 {offsets = [0, 32], sizes = [8, 32], strides = [1, 1]} : vector<8x128xf32> to vector<8x32xf32>
    %71 = arith.truncf %70 : vector<8x32xf32> to vector<8x32xbf16>
    %72 = vector.extract_strided_slice %38 {offsets = [0, 32], sizes = [8, 32], strides = [1, 1]} : vector<8x128xf32> to vector<8x32xf32>
    %73 = arith.truncf %72 : vector<8x32xf32> to vector<8x32xbf16>
    %cst_29 = arith.constant dense<0.000000e+00> : vector<8x8xf32>
    %74 = tpu.matmul %71, %69, %cst_29 {dimension_numbers = #tpu.dot_dimension_numbers<[1], [1], [0], [0], [0, 0, 1, 0], [], []>} : vector<8x32xbf16>, vector<8x32xbf16>, vector<8x8xf32> -> vector<8x8xf32>
    %cst_30 = arith.constant 0.176776692 : f32
    %75 = vector.broadcast %cst_30 : f32 to vector<8x8xf32>
    %76 = arith.mulf %74, %75 : vector<8x8xf32>
    %77 = vector.broadcast %7 : vector<8x1xf32> to vector<8x8xf32>
    %78 = arith.addf %76, %77 : vector<8x8xf32>
    %cst_31 = arith.constant dense<0xFF800000> : vector<8xf32>
    %79 = vector.multi_reduction <maximumf>, %78, %cst_31 [0] : vector<8x8xf32> to vector<8xf32>
    %80 = vector.shape_cast %79 : vector<8xf32> to vector<1x8xf32>
    %81 = vector.broadcast %80 : vector<1x8xf32> to vector<8x8xf32>
    %82 = arith.subf %78, %81 : vector<8x8xf32>
    %83 = math.exp %82 : vector<8x8xf32>
    %cst_32 = arith.constant dense<0.000000e+00> : vector<8xf32>
    %84 = vector.multi_reduction <add>, %83, %cst_32 [0] : vector<8x8xf32> to vector<8xf32>
    %85 = vector.shape_cast %84 : vector<8xf32> to vector<1x8xf32>
    %86 = tpu.reciprocal %85 {approx = true} : vector<1x8xf32> -> vector<1x8xf32>
    %87 = vector.broadcast %86 : vector<1x8xf32> to vector<8x8xf32>
    %88 = arith.mulf %83, %87 : vector<8x8xf32>
    %89 = arith.truncf %88 : vector<8x8xf32> to vector<8x8xbf16>
    %cst_33 = arith.constant dense<0.000000e+00> : vector<8x32xf32>
    %90 = tpu.matmul %89, %73, %cst_33 {dimension_numbers = #tpu.dot_dimension_numbers<[0], [0], [1], [1], [0, 1, 1, 1], [], []>} : vector<8x8xbf16>, vector<8x32xbf16>, vector<8x32xf32> -> vector<8x32xf32>
    %91 = arith.truncf %90 : vector<8x32xf32> to vector<8x32xbf16>
    %92 = vector.extract_strided_slice %40 {offsets = [32, 0], sizes = [32, 128], strides = [1, 1]} : vector<128x128xbf16> to vector<32x128xbf16>
    %cst_34 = arith.constant dense<0.000000e+00> : vector<8x128xf32>
    %93 = tpu.matmul %91, %92, %cst_34 {dimension_numbers = #tpu.dot_dimension_numbers<[1], [0], [0], [1], [0, 0, 1, 1], [], []>} : vector<8x32xbf16>, vector<32x128xbf16>, vector<8x128xf32> -> vector<8x128xf32>
    %94 = arith.addf %67, %93 : vector<8x128xf32>
    %95 = vector.extract_strided_slice %32 {offsets = [0, 64], sizes = [8, 32], strides = [1, 1]} : vector<8x128xf32> to vector<8x32xf32>
    %96 = arith.truncf %95 : vector<8x32xf32> to vector<8x32xbf16>
    %97 = vector.extract_strided_slice %37 {offsets = [0, 64], sizes = [8, 32], strides = [1, 1]} : vector<8x128xf32> to vector<8x32xf32>
    %98 = arith.truncf %97 : vector<8x32xf32> to vector<8x32xbf16>
    %99 = vector.extract_strided_slice %38 {offsets = [0, 64], sizes = [8, 32], strides = [1, 1]} : vector<8x128xf32> to vector<8x32xf32>
    %100 = arith.truncf %99 : vector<8x32xf32> to vector<8x32xbf16>
    %cst_35 = arith.constant dense<0.000000e+00> : vector<8x8xf32>
    %101 = tpu.matmul %98, %96, %cst_35 {dimension_numbers = #tpu.dot_dimension_numbers<[1], [1], [0], [0], [0, 0, 1, 0], [], []>} : vector<8x32xbf16>, vector<8x32xbf16>, vector<8x8xf32> -> vector<8x8xf32>
    %cst_36 = arith.constant 0.176776692 : f32
    %102 = vector.broadcast %cst_36 : f32 to vector<8x8xf32>
    %103 = arith.mulf %101, %102 : vector<8x8xf32>
    %104 = vector.broadcast %7 : vector<8x1xf32> to vector<8x8xf32>
    %105 = arith.addf %103, %104 : vector<8x8xf32>
    %cst_37 = arith.constant dense<0xFF800000> : vector<8xf32>
    %106 = vector.multi_reduction <maximumf>, %105, %cst_37 [0] : vector<8x8xf32> to vector<8xf32>
    %107 = vector.shape_cast %106 : vector<8xf32> to vector<1x8xf32>
    %108 = vector.broadcast %107 : vector<1x8xf32> to vector<8x8xf32>
    %109 = arith.subf %105, %108 : vector<8x8xf32>
    %110 = math.exp %109 : vector<8x8xf32>
    %cst_38 = arith.constant dense<0.000000e+00> : vector<8xf32>
    %111 = vector.multi_reduction <add>, %110, %cst_38 [0] : vector<8x8xf32> to vector<8xf32>
    %112 = vector.shape_cast %111 : vector<8xf32> to vector<1x8xf32>
    %113 = tpu.reciprocal %112 {approx = true} : vector<1x8xf32> -> vector<1x8xf32>
    %114 = vector.broadcast %113 : vector<1x8xf32> to vector<8x8xf32>
    %115 = arith.mulf %110, %114 : vector<8x8xf32>
    %116 = arith.truncf %115 : vector<8x8xf32> to vector<8x8xbf16>
    %cst_39 = arith.constant dense<0.000000e+00> : vector<8x32xf32>
    %117 = tpu.matmul %116, %100, %cst_39 {dimension_numbers = #tpu.dot_dimension_numbers<[0], [0], [1], [1], [0, 1, 1, 1], [], []>} : vector<8x8xbf16>, vector<8x32xbf16>, vector<8x32xf32> -> vector<8x32xf32>
    %118 = arith.truncf %117 : vector<8x32xf32> to vector<8x32xbf16>
    %119 = vector.extract_strided_slice %40 {offsets = [64, 0], sizes = [32, 128], strides = [1, 1]} : vector<128x128xbf16> to vector<32x128xbf16>
    %cst_40 = arith.constant dense<0.000000e+00> : vector<8x128xf32>
    %120 = tpu.matmul %118, %119, %cst_40 {dimension_numbers = #tpu.dot_dimension_numbers<[1], [0], [0], [1], [0, 0, 1, 1], [], []>} : vector<8x32xbf16>, vector<32x128xbf16>, vector<8x128xf32> -> vector<8x128xf32>
    %121 = arith.addf %94, %120 : vector<8x128xf32>
    %122 = vector.extract_strided_slice %32 {offsets = [0, 96], sizes = [8, 32], strides = [1, 1]} : vector<8x128xf32> to vector<8x32xf32>
    %123 = arith.truncf %122 : vector<8x32xf32> to vector<8x32xbf16>
    %124 = vector.extract_strided_slice %37 {offsets = [0, 96], sizes = [8, 32], strides = [1, 1]} : vector<8x128xf32> to vector<8x32xf32>
    %125 = arith.truncf %124 : vector<8x32xf32> to vector<8x32xbf16>
    %126 = vector.extract_strided_slice %38 {offsets = [0, 96], sizes = [8, 32], strides = [1, 1]} : vector<8x128xf32> to vector<8x32xf32>
    %127 = arith.truncf %126 : vector<8x32xf32> to vector<8x32xbf16>
    %cst_41 = arith.constant dense<0.000000e+00> : vector<8x8xf32>
    %128 = tpu.matmul %125, %123, %cst_41 {dimension_numbers = #tpu.dot_dimension_numbers<[1], [1], [0], [0], [0, 0, 1, 0], [], []>} : vector<8x32xbf16>, vector<8x32xbf16>, vector<8x8xf32> -> vector<8x8xf32>
    %cst_42 = arith.constant 0.176776692 : f32
    %129 = vector.broadcast %cst_42 : f32 to vector<8x8xf32>
    %130 = arith.mulf %128, %129 : vector<8x8xf32>
    %131 = vector.broadcast %7 : vector<8x1xf32> to vector<8x8xf32>
    %132 = arith.addf %130, %131 : vector<8x8xf32>
    %cst_43 = arith.constant dense<0xFF800000> : vector<8xf32>
    %133 = vector.multi_reduction <maximumf>, %132, %cst_43 [0] : vector<8x8xf32> to vector<8xf32>
    %134 = vector.shape_cast %133 : vector<8xf32> to vector<1x8xf32>
    %135 = vector.broadcast %134 : vector<1x8xf32> to vector<8x8xf32>
    %136 = arith.subf %132, %135 : vector<8x8xf32>
    %137 = math.exp %136 : vector<8x8xf32>
    %cst_44 = arith.constant dense<0.000000e+00> : vector<8xf32>
    %138 = vector.multi_reduction <add>, %137, %cst_44 [0] : vector<8x8xf32> to vector<8xf32>
    %139 = vector.shape_cast %138 : vector<8xf32> to vector<1x8xf32>
    %140 = tpu.reciprocal %139 {approx = true} : vector<1x8xf32> -> vector<1x8xf32>
    %141 = vector.broadcast %140 : vector<1x8xf32> to vector<8x8xf32>
    %142 = arith.mulf %137, %141 : vector<8x8xf32>
    %143 = arith.truncf %142 : vector<8x8xf32> to vector<8x8xbf16>
    %cst_45 = arith.constant dense<0.000000e+00> : vector<8x32xf32>
    %144 = tpu.matmul %143, %127, %cst_45 {dimension_numbers = #tpu.dot_dimension_numbers<[0], [0], [1], [1], [0, 1, 1, 1], [], []>} : vector<8x8xbf16>, vector<8x32xbf16>, vector<8x32xf32> -> vector<8x32xf32>
    %145 = arith.truncf %144 : vector<8x32xf32> to vector<8x32xbf16>
    %146 = vector.extract_strided_slice %40 {offsets = [96, 0], sizes = [32, 128], strides = [1, 1]} : vector<128x128xbf16> to vector<32x128xbf16>
    %cst_46 = arith.constant dense<0.000000e+00> : vector<8x128xf32>
    %147 = tpu.matmul %145, %146, %cst_46 {dimension_numbers = #tpu.dot_dimension_numbers<[1], [0], [0], [1], [0, 0, 1, 1], [], []>} : vector<8x32xbf16>, vector<32x128xbf16>, vector<8x128xf32> -> vector<8x128xf32>
    %148 = arith.addf %121, %147 : vector<8x128xf32>
    %c0_47 = arith.constant 0 : index
    %c0_48 = arith.constant 0 : index
    %c0_49 = arith.constant 0 : index
    %149 = vector.load %arg6[%c0_47, %c0_48, %c0_49] : memref<2x1x128xf32, #tpu.memory_space<vmem>>, vector<1x1x128xf32>
    %150 = vector.shape_cast %149 : vector<1x1x128xf32> to vector<1x128xf32>
    %151 = arith.mulf %148, %148 : vector<8x128xf32>
    %cst_50 = arith.constant dense<0.000000e+00> : vector<8xf32>
    %152 = vector.multi_reduction <add>, %151, %cst_50 [1] : vector<8x128xf32> to vector<8xf32>
    %153 = vector.shape_cast %152 : vector<8xf32> to vector<8x1xf32>
    %cst_51 = arith.constant 1.280000e+02 : f32
    %154 = vector.broadcast %cst_51 : f32 to vector<8x1xf32>
    %155 = arith.divf %153, %154 : vector<8x1xf32>
    %cst_52 = arith.constant 9.99999997E-7 : f32
    %156 = vector.broadcast %cst_52 : f32 to vector<8x1xf32>
    %157 = arith.addf %155, %156 : vector<8x1xf32>
    %158 = math.rsqrt %157 : vector<8x1xf32>
    %159 = vector.broadcast %158 : vector<8x1xf32> to vector<8x128xf32>
    %160 = arith.mulf %148, %159 : vector<8x128xf32>
    %161 = vector.broadcast %150 : vector<1x128xf32> to vector<8x128xf32>
    %162 = arith.mulf %160, %161 : vector<8x128xf32>
    %163 = arith.truncf %162 : vector<8x128xf32> to vector<8x128xbf16>
    %c0_53 = arith.constant 0 : index
    %c0_54 = arith.constant 0 : index
    %c0_55 = arith.constant 0 : index
    %164 = vector.load %arg10[%c0_53, %c0_54, %c0_55] : memref<2x128x512xbf16, #tpu.memory_space<vmem>>, vector<1x128x512xbf16>
    %165 = vector.shape_cast %164 : vector<1x128x512xbf16> to vector<128x512xbf16>
    %cst_56 = arith.constant dense<0.000000e+00> : vector<8x512xf32>
    %166 = tpu.matmul %163, %165, %cst_56 {dimension_numbers = #tpu.dot_dimension_numbers<[1], [0], [0], [1], [0, 0, 1, 1], [], []>} : vector<8x128xbf16>, vector<128x512xbf16>, vector<8x512xf32> -> vector<8x512xf32>
    %167 = vector.extract_strided_slice %166 {offsets = [0, 0], sizes = [8, 256], strides = [1, 1]} : vector<8x512xf32> to vector<8x256xf32>
    %168 = vector.extract_strided_slice %166 {offsets = [0, 256], sizes = [8, 256], strides = [1, 1]} : vector<8x512xf32> to vector<8x256xf32>
    %169 = arith.negf %167 : vector<8x256xf32>
    %170 = math.exp %169 : vector<8x256xf32>
    %cst_57 = arith.constant 1.000000e+00 : f32
    %171 = vector.broadcast %cst_57 : f32 to vector<8x256xf32>
    %172 = arith.addf %171, %170 : vector<8x256xf32>
    %173 = arith.divf %171, %172 : vector<8x256xf32>
    %174 = arith.mulf %167, %173 : vector<8x256xf32>
    %175 = arith.mulf %174, %168 : vector<8x256xf32>
    %176 = arith.truncf %175 : vector<8x256xf32> to vector<8x256xbf16>
    %c0_58 = arith.constant 0 : index
    %c0_59 = arith.constant 0 : index
    %c0_60 = arith.constant 0 : index
    %177 = vector.load %arg11[%c0_58, %c0_59, %c0_60] : memref<2x256x128xbf16, #tpu.memory_space<vmem>>, vector<1x256x128xbf16>
    %178 = vector.shape_cast %177 : vector<1x256x128xbf16> to vector<256x128xbf16>
    %cst_61 = arith.constant dense<0.000000e+00> : vector<8x128xf32>
    %179 = tpu.matmul %176, %178, %cst_61 {dimension_numbers = #tpu.dot_dimension_numbers<[1], [0], [0], [1], [0, 0, 1, 1], [], []>} : vector<8x256xbf16>, vector<256x128xbf16>, vector<8x128xf32> -> vector<8x128xf32>
    %180 = arith.addf %148, %179 : vector<8x128xf32>
    %c1 = arith.constant 1 : index
    %c0_62 = arith.constant 0 : index
    %c0_63 = arith.constant 0 : index
    %181 = vector.load %arg5[%c1, %c0_62, %c0_63] : memref<2x1x128xf32, #tpu.memory_space<vmem>>, vector<1x1x128xf32>
    %182 = vector.shape_cast %181 : vector<1x1x128xf32> to vector<1x128xf32>
    %183 = arith.mulf %180, %180 : vector<8x128xf32>
    %cst_64 = arith.constant dense<0.000000e+00> : vector<8xf32>
    %184 = vector.multi_reduction <add>, %183, %cst_64 [1] : vector<8x128xf32> to vector<8xf32>
    %185 = vector.shape_cast %184 : vector<8xf32> to vector<8x1xf32>
    %cst_65 = arith.constant 1.280000e+02 : f32
    %186 = vector.broadcast %cst_65 : f32 to vector<8x1xf32>
    %187 = arith.divf %185, %186 : vector<8x1xf32>
    %cst_66 = arith.constant 9.99999997E-7 : f32
    %188 = vector.broadcast %cst_66 : f32 to vector<8x1xf32>
    %189 = arith.addf %187, %188 : vector<8x1xf32>
    %190 = math.rsqrt %189 : vector<8x1xf32>
    %191 = vector.broadcast %190 : vector<8x1xf32> to vector<8x128xf32>
    %192 = arith.mulf %180, %191 : vector<8x128xf32>
    %193 = vector.broadcast %182 : vector<1x128xf32> to vector<8x128xf32>
    %194 = arith.mulf %192, %193 : vector<8x128xf32>
    %195 = arith.truncf %194 : vector<8x128xf32> to vector<8x128xbf16>
    %c1_67 = arith.constant 1 : index
    %c0_68 = arith.constant 0 : index
    %c0_69 = arith.constant 0 : index
    %196 = vector.load %arg8[%c1_67, %c0_68, %c0_69] : memref<2x128x640xbf16, #tpu.memory_space<vmem>>, vector<1x128x640xbf16>
    %197 = vector.shape_cast %196 : vector<1x128x640xbf16> to vector<128x640xbf16>
    %cst_70 = arith.constant dense<0.000000e+00> : vector<8x640xf32>
    %198 = tpu.matmul %195, %197, %cst_70 {dimension_numbers = #tpu.dot_dimension_numbers<[1], [0], [0], [1], [0, 0, 1, 1], [], []>} : vector<8x128xbf16>, vector<128x640xbf16>, vector<8x640xf32> -> vector<8x640xf32>
    %199 = vector.extract_strided_slice %198 {offsets = [0, 0], sizes = [8, 128], strides = [1, 1]} : vector<8x640xf32> to vector<8x128xf32>
    %200 = arith.mulf %199, %8 : vector<8x128xf32>
    %201 = vector.extract_strided_slice %198 {offsets = [0, 128], sizes = [8, 128], strides = [1, 1]} : vector<8x640xf32> to vector<8x128xf32>
    %202 = arith.mulf %201, %9 : vector<8x128xf32>
    %203 = arith.addf %200, %202 : vector<8x128xf32>
    %204 = vector.extract_strided_slice %198 {offsets = [0, 256], sizes = [8, 128], strides = [1, 1]} : vector<8x640xf32> to vector<8x128xf32>
    %205 = arith.mulf %204, %8 : vector<8x128xf32>
    %206 = vector.extract_strided_slice %198 {offsets = [0, 384], sizes = [8, 128], strides = [1, 1]} : vector<8x640xf32> to vector<8x128xf32>
    %207 = arith.mulf %206, %9 : vector<8x128xf32>
    %208 = arith.addf %205, %207 : vector<8x128xf32>
    %209 = vector.extract_strided_slice %198 {offsets = [0, 512], sizes = [8, 128], strides = [1, 1]} : vector<8x640xf32> to vector<8x128xf32>
    %c1_71 = arith.constant 1 : index
    %c0_72 = arith.constant 0 : index
    %c0_73 = arith.constant 0 : index
    %210 = vector.load %arg9[%c1_71, %c0_72, %c0_73] : memref<2x128x128xbf16, #tpu.memory_space<vmem>>, vector<1x128x128xbf16>
    %211 = vector.shape_cast %210 : vector<1x128x128xbf16> to vector<128x128xbf16>
    %212 = vector.extract_strided_slice %203 {offsets = [0, 0], sizes = [8, 32], strides = [1, 1]} : vector<8x128xf32> to vector<8x32xf32>
    %213 = arith.truncf %212 : vector<8x32xf32> to vector<8x32xbf16>
    %214 = vector.extract_strided_slice %208 {offsets = [0, 0], sizes = [8, 32], strides = [1, 1]} : vector<8x128xf32> to vector<8x32xf32>
    %215 = arith.truncf %214 : vector<8x32xf32> to vector<8x32xbf16>
    %216 = vector.extract_strided_slice %209 {offsets = [0, 0], sizes = [8, 32], strides = [1, 1]} : vector<8x128xf32> to vector<8x32xf32>
    %217 = arith.truncf %216 : vector<8x32xf32> to vector<8x32xbf16>
    %cst_74 = arith.constant dense<0.000000e+00> : vector<8x8xf32>
    %218 = tpu.matmul %215, %213, %cst_74 {dimension_numbers = #tpu.dot_dimension_numbers<[1], [1], [0], [0], [0, 0, 1, 0], [], []>} : vector<8x32xbf16>, vector<8x32xbf16>, vector<8x8xf32> -> vector<8x8xf32>
    %cst_75 = arith.constant 0.176776692 : f32
    %219 = vector.broadcast %cst_75 : f32 to vector<8x8xf32>
    %220 = arith.mulf %218, %219 : vector<8x8xf32>
    %221 = vector.broadcast %7 : vector<8x1xf32> to vector<8x8xf32>
    %222 = arith.addf %220, %221 : vector<8x8xf32>
    %cst_76 = arith.constant dense<0xFF800000> : vector<8xf32>
    %223 = vector.multi_reduction <maximumf>, %222, %cst_76 [0] : vector<8x8xf32> to vector<8xf32>
    %224 = vector.shape_cast %223 : vector<8xf32> to vector<1x8xf32>
    %225 = vector.broadcast %224 : vector<1x8xf32> to vector<8x8xf32>
    %226 = arith.subf %222, %225 : vector<8x8xf32>
    %227 = math.exp %226 : vector<8x8xf32>
    %cst_77 = arith.constant dense<0.000000e+00> : vector<8xf32>
    %228 = vector.multi_reduction <add>, %227, %cst_77 [0] : vector<8x8xf32> to vector<8xf32>
    %229 = vector.shape_cast %228 : vector<8xf32> to vector<1x8xf32>
    %230 = tpu.reciprocal %229 {approx = true} : vector<1x8xf32> -> vector<1x8xf32>
    %231 = vector.broadcast %230 : vector<1x8xf32> to vector<8x8xf32>
    %232 = arith.mulf %227, %231 : vector<8x8xf32>
    %233 = arith.truncf %232 : vector<8x8xf32> to vector<8x8xbf16>
    %cst_78 = arith.constant dense<0.000000e+00> : vector<8x32xf32>
    %234 = tpu.matmul %233, %217, %cst_78 {dimension_numbers = #tpu.dot_dimension_numbers<[0], [0], [1], [1], [0, 1, 1, 1], [], []>} : vector<8x8xbf16>, vector<8x32xbf16>, vector<8x32xf32> -> vector<8x32xf32>
    %235 = arith.truncf %234 : vector<8x32xf32> to vector<8x32xbf16>
    %236 = vector.extract_strided_slice %211 {offsets = [0, 0], sizes = [32, 128], strides = [1, 1]} : vector<128x128xbf16> to vector<32x128xbf16>
    %cst_79 = arith.constant dense<0.000000e+00> : vector<8x128xf32>
    %237 = tpu.matmul %235, %236, %cst_79 {dimension_numbers = #tpu.dot_dimension_numbers<[1], [0], [0], [1], [0, 0, 1, 1], [], []>} : vector<8x32xbf16>, vector<32x128xbf16>, vector<8x128xf32> -> vector<8x128xf32>
    %238 = arith.addf %180, %237 : vector<8x128xf32>
    %239 = vector.extract_strided_slice %203 {offsets = [0, 32], sizes = [8, 32], strides = [1, 1]} : vector<8x128xf32> to vector<8x32xf32>
    %240 = arith.truncf %239 : vector<8x32xf32> to vector<8x32xbf16>
    %241 = vector.extract_strided_slice %208 {offsets = [0, 32], sizes = [8, 32], strides = [1, 1]} : vector<8x128xf32> to vector<8x32xf32>
    %242 = arith.truncf %241 : vector<8x32xf32> to vector<8x32xbf16>
    %243 = vector.extract_strided_slice %209 {offsets = [0, 32], sizes = [8, 32], strides = [1, 1]} : vector<8x128xf32> to vector<8x32xf32>
    %244 = arith.truncf %243 : vector<8x32xf32> to vector<8x32xbf16>
    %cst_80 = arith.constant dense<0.000000e+00> : vector<8x8xf32>
    %245 = tpu.matmul %242, %240, %cst_80 {dimension_numbers = #tpu.dot_dimension_numbers<[1], [1], [0], [0], [0, 0, 1, 0], [], []>} : vector<8x32xbf16>, vector<8x32xbf16>, vector<8x8xf32> -> vector<8x8xf32>
    %cst_81 = arith.constant 0.176776692 : f32
    %246 = vector.broadcast %cst_81 : f32 to vector<8x8xf32>
    %247 = arith.mulf %245, %246 : vector<8x8xf32>
    %248 = vector.broadcast %7 : vector<8x1xf32> to vector<8x8xf32>
    %249 = arith.addf %247, %248 : vector<8x8xf32>
    %cst_82 = arith.constant dense<0xFF800000> : vector<8xf32>
    %250 = vector.multi_reduction <maximumf>, %249, %cst_82 [0] : vector<8x8xf32> to vector<8xf32>
    %251 = vector.shape_cast %250 : vector<8xf32> to vector<1x8xf32>
    %252 = vector.broadcast %251 : vector<1x8xf32> to vector<8x8xf32>
    %253 = arith.subf %249, %252 : vector<8x8xf32>
    %254 = math.exp %253 : vector<8x8xf32>
    %cst_83 = arith.constant dense<0.000000e+00> : vector<8xf32>
    %255 = vector.multi_reduction <add>, %254, %cst_83 [0] : vector<8x8xf32> to vector<8xf32>
    %256 = vector.shape_cast %255 : vector<8xf32> to vector<1x8xf32>
    %257 = tpu.reciprocal %256 {approx = true} : vector<1x8xf32> -> vector<1x8xf32>
    %258 = vector.broadcast %257 : vector<1x8xf32> to vector<8x8xf32>
    %259 = arith.mulf %254, %258 : vector<8x8xf32>
    %260 = arith.truncf %259 : vector<8x8xf32> to vector<8x8xbf16>
    %cst_84 = arith.constant dense<0.000000e+00> : vector<8x32xf32>
    %261 = tpu.matmul %260, %244, %cst_84 {dimension_numbers = #tpu.dot_dimension_numbers<[0], [0], [1], [1], [0, 1, 1, 1], [], []>} : vector<8x8xbf16>, vector<8x32xbf16>, vector<8x32xf32> -> vector<8x32xf32>
    %262 = arith.truncf %261 : vector<8x32xf32> to vector<8x32xbf16>
    %263 = vector.extract_strided_slice %211 {offsets = [32, 0], sizes = [32, 128], strides = [1, 1]} : vector<128x128xbf16> to vector<32x128xbf16>
    %cst_85 = arith.constant dense<0.000000e+00> : vector<8x128xf32>
    %264 = tpu.matmul %262, %263, %cst_85 {dimension_numbers = #tpu.dot_dimension_numbers<[1], [0], [0], [1], [0, 0, 1, 1], [], []>} : vector<8x32xbf16>, vector<32x128xbf16>, vector<8x128xf32> -> vector<8x128xf32>
    %265 = arith.addf %238, %264 : vector<8x128xf32>
    %266 = vector.extract_strided_slice %203 {offsets = [0, 64], sizes = [8, 32], strides = [1, 1]} : vector<8x128xf32> to vector<8x32xf32>
    %267 = arith.truncf %266 : vector<8x32xf32> to vector<8x32xbf16>
    %268 = vector.extract_strided_slice %208 {offsets = [0, 64], sizes = [8, 32], strides = [1, 1]} : vector<8x128xf32> to vector<8x32xf32>
    %269 = arith.truncf %268 : vector<8x32xf32> to vector<8x32xbf16>
    %270 = vector.extract_strided_slice %209 {offsets = [0, 64], sizes = [8, 32], strides = [1, 1]} : vector<8x128xf32> to vector<8x32xf32>
    %271 = arith.truncf %270 : vector<8x32xf32> to vector<8x32xbf16>
    %cst_86 = arith.constant dense<0.000000e+00> : vector<8x8xf32>
    %272 = tpu.matmul %269, %267, %cst_86 {dimension_numbers = #tpu.dot_dimension_numbers<[1], [1], [0], [0], [0, 0, 1, 0], [], []>} : vector<8x32xbf16>, vector<8x32xbf16>, vector<8x8xf32> -> vector<8x8xf32>
    %cst_87 = arith.constant 0.176776692 : f32
    %273 = vector.broadcast %cst_87 : f32 to vector<8x8xf32>
    %274 = arith.mulf %272, %273 : vector<8x8xf32>
    %275 = vector.broadcast %7 : vector<8x1xf32> to vector<8x8xf32>
    %276 = arith.addf %274, %275 : vector<8x8xf32>
    %cst_88 = arith.constant dense<0xFF800000> : vector<8xf32>
    %277 = vector.multi_reduction <maximumf>, %276, %cst_88 [0] : vector<8x8xf32> to vector<8xf32>
    %278 = vector.shape_cast %277 : vector<8xf32> to vector<1x8xf32>
    %279 = vector.broadcast %278 : vector<1x8xf32> to vector<8x8xf32>
    %280 = arith.subf %276, %279 : vector<8x8xf32>
    %281 = math.exp %280 : vector<8x8xf32>
    %cst_89 = arith.constant dense<0.000000e+00> : vector<8xf32>
    %282 = vector.multi_reduction <add>, %281, %cst_89 [0] : vector<8x8xf32> to vector<8xf32>
    %283 = vector.shape_cast %282 : vector<8xf32> to vector<1x8xf32>
    %284 = tpu.reciprocal %283 {approx = true} : vector<1x8xf32> -> vector<1x8xf32>
    %285 = vector.broadcast %284 : vector<1x8xf32> to vector<8x8xf32>
    %286 = arith.mulf %281, %285 : vector<8x8xf32>
    %287 = arith.truncf %286 : vector<8x8xf32> to vector<8x8xbf16>
    %cst_90 = arith.constant dense<0.000000e+00> : vector<8x32xf32>
    %288 = tpu.matmul %287, %271, %cst_90 {dimension_numbers = #tpu.dot_dimension_numbers<[0], [0], [1], [1], [0, 1, 1, 1], [], []>} : vector<8x8xbf16>, vector<8x32xbf16>, vector<8x32xf32> -> vector<8x32xf32>
    %289 = arith.truncf %288 : vector<8x32xf32> to vector<8x32xbf16>
    %290 = vector.extract_strided_slice %211 {offsets = [64, 0], sizes = [32, 128], strides = [1, 1]} : vector<128x128xbf16> to vector<32x128xbf16>
    %cst_91 = arith.constant dense<0.000000e+00> : vector<8x128xf32>
    %291 = tpu.matmul %289, %290, %cst_91 {dimension_numbers = #tpu.dot_dimension_numbers<[1], [0], [0], [1], [0, 0, 1, 1], [], []>} : vector<8x32xbf16>, vector<32x128xbf16>, vector<8x128xf32> -> vector<8x128xf32>
    %292 = arith.addf %265, %291 : vector<8x128xf32>
    %293 = vector.extract_strided_slice %203 {offsets = [0, 96], sizes = [8, 32], strides = [1, 1]} : vector<8x128xf32> to vector<8x32xf32>
    %294 = arith.truncf %293 : vector<8x32xf32> to vector<8x32xbf16>
    %295 = vector.extract_strided_slice %208 {offsets = [0, 96], sizes = [8, 32], strides = [1, 1]} : vector<8x128xf32> to vector<8x32xf32>
    %296 = arith.truncf %295 : vector<8x32xf32> to vector<8x32xbf16>
    %297 = vector.extract_strided_slice %209 {offsets = [0, 96], sizes = [8, 32], strides = [1, 1]} : vector<8x128xf32> to vector<8x32xf32>
    %298 = arith.truncf %297 : vector<8x32xf32> to vector<8x32xbf16>
    %cst_92 = arith.constant dense<0.000000e+00> : vector<8x8xf32>
    %299 = tpu.matmul %296, %294, %cst_92 {dimension_numbers = #tpu.dot_dimension_numbers<[1], [1], [0], [0], [0, 0, 1, 0], [], []>} : vector<8x32xbf16>, vector<8x32xbf16>, vector<8x8xf32> -> vector<8x8xf32>
    %cst_93 = arith.constant 0.176776692 : f32
    %300 = vector.broadcast %cst_93 : f32 to vector<8x8xf32>
    %301 = arith.mulf %299, %300 : vector<8x8xf32>
    %302 = vector.broadcast %7 : vector<8x1xf32> to vector<8x8xf32>
    %303 = arith.addf %301, %302 : vector<8x8xf32>
    %cst_94 = arith.constant dense<0xFF800000> : vector<8xf32>
    %304 = vector.multi_reduction <maximumf>, %303, %cst_94 [0] : vector<8x8xf32> to vector<8xf32>
    %305 = vector.shape_cast %304 : vector<8xf32> to vector<1x8xf32>
    %306 = vector.broadcast %305 : vector<1x8xf32> to vector<8x8xf32>
    %307 = arith.subf %303, %306 : vector<8x8xf32>
    %308 = math.exp %307 : vector<8x8xf32>
    %cst_95 = arith.constant dense<0.000000e+00> : vector<8xf32>
    %309 = vector.multi_reduction <add>, %308, %cst_95 [0] : vector<8x8xf32> to vector<8xf32>
    %310 = vector.shape_cast %309 : vector<8xf32> to vector<1x8xf32>
    %311 = tpu.reciprocal %310 {approx = true} : vector<1x8xf32> -> vector<1x8xf32>
    %312 = vector.broadcast %311 : vector<1x8xf32> to vector<8x8xf32>
    %313 = arith.mulf %308, %312 : vector<8x8xf32>
    %314 = arith.truncf %313 : vector<8x8xf32> to vector<8x8xbf16>
    %cst_96 = arith.constant dense<0.000000e+00> : vector<8x32xf32>
    %315 = tpu.matmul %314, %298, %cst_96 {dimension_numbers = #tpu.dot_dimension_numbers<[0], [0], [1], [1], [0, 1, 1, 1], [], []>} : vector<8x8xbf16>, vector<8x32xbf16>, vector<8x32xf32> -> vector<8x32xf32>
    %316 = arith.truncf %315 : vector<8x32xf32> to vector<8x32xbf16>
    %317 = vector.extract_strided_slice %211 {offsets = [96, 0], sizes = [32, 128], strides = [1, 1]} : vector<128x128xbf16> to vector<32x128xbf16>
    %cst_97 = arith.constant dense<0.000000e+00> : vector<8x128xf32>
    %318 = tpu.matmul %316, %317, %cst_97 {dimension_numbers = #tpu.dot_dimension_numbers<[1], [0], [0], [1], [0, 0, 1, 1], [], []>} : vector<8x32xbf16>, vector<32x128xbf16>, vector<8x128xf32> -> vector<8x128xf32>
    %319 = arith.addf %292, %318 : vector<8x128xf32>
    %c1_98 = arith.constant 1 : index
    %c0_99 = arith.constant 0 : index
    %c0_100 = arith.constant 0 : index
    %320 = vector.load %arg6[%c1_98, %c0_99, %c0_100] : memref<2x1x128xf32, #tpu.memory_space<vmem>>, vector<1x1x128xf32>
    %321 = vector.shape_cast %320 : vector<1x1x128xf32> to vector<1x128xf32>
    %322 = arith.mulf %319, %319 : vector<8x128xf32>
    %cst_101 = arith.constant dense<0.000000e+00> : vector<8xf32>
    %323 = vector.multi_reduction <add>, %322, %cst_101 [1] : vector<8x128xf32> to vector<8xf32>
    %324 = vector.shape_cast %323 : vector<8xf32> to vector<8x1xf32>
    %cst_102 = arith.constant 1.280000e+02 : f32
    %325 = vector.broadcast %cst_102 : f32 to vector<8x1xf32>
    %326 = arith.divf %324, %325 : vector<8x1xf32>
    %cst_103 = arith.constant 9.99999997E-7 : f32
    %327 = vector.broadcast %cst_103 : f32 to vector<8x1xf32>
    %328 = arith.addf %326, %327 : vector<8x1xf32>
    %329 = math.rsqrt %328 : vector<8x1xf32>
    %330 = vector.broadcast %329 : vector<8x1xf32> to vector<8x128xf32>
    %331 = arith.mulf %319, %330 : vector<8x128xf32>
    %332 = vector.broadcast %321 : vector<1x128xf32> to vector<8x128xf32>
    %333 = arith.mulf %331, %332 : vector<8x128xf32>
    %334 = arith.truncf %333 : vector<8x128xf32> to vector<8x128xbf16>
    %c1_104 = arith.constant 1 : index
    %c0_105 = arith.constant 0 : index
    %c0_106 = arith.constant 0 : index
    %335 = vector.load %arg10[%c1_104, %c0_105, %c0_106] : memref<2x128x512xbf16, #tpu.memory_space<vmem>>, vector<1x128x512xbf16>
    %336 = vector.shape_cast %335 : vector<1x128x512xbf16> to vector<128x512xbf16>
    %cst_107 = arith.constant dense<0.000000e+00> : vector<8x512xf32>
    %337 = tpu.matmul %334, %336, %cst_107 {dimension_numbers = #tpu.dot_dimension_numbers<[1], [0], [0], [1], [0, 0, 1, 1], [], []>} : vector<8x128xbf16>, vector<128x512xbf16>, vector<8x512xf32> -> vector<8x512xf32>
    %338 = vector.extract_strided_slice %337 {offsets = [0, 0], sizes = [8, 256], strides = [1, 1]} : vector<8x512xf32> to vector<8x256xf32>
    %339 = vector.extract_strided_slice %337 {offsets = [0, 256], sizes = [8, 256], strides = [1, 1]} : vector<8x512xf32> to vector<8x256xf32>
    %340 = arith.negf %338 : vector<8x256xf32>
    %341 = math.exp %340 : vector<8x256xf32>
    %cst_108 = arith.constant 1.000000e+00 : f32
    %342 = vector.broadcast %cst_108 : f32 to vector<8x256xf32>
    %343 = arith.addf %342, %341 : vector<8x256xf32>
    %344 = arith.divf %342, %343 : vector<8x256xf32>
    %345 = arith.mulf %338, %344 : vector<8x256xf32>
    %346 = arith.mulf %345, %339 : vector<8x256xf32>
    %347 = arith.truncf %346 : vector<8x256xf32> to vector<8x256xbf16>
    %c1_109 = arith.constant 1 : index
    %c0_110 = arith.constant 0 : index
    %c0_111 = arith.constant 0 : index
    %348 = vector.load %arg11[%c1_109, %c0_110, %c0_111] : memref<2x256x128xbf16, #tpu.memory_space<vmem>>, vector<1x256x128xbf16>
    %349 = vector.shape_cast %348 : vector<1x256x128xbf16> to vector<256x128xbf16>
    %cst_112 = arith.constant dense<0.000000e+00> : vector<8x128xf32>
    %350 = tpu.matmul %347, %349, %cst_112 {dimension_numbers = #tpu.dot_dimension_numbers<[1], [0], [0], [1], [0, 0, 1, 1], [], []>} : vector<8x256xbf16>, vector<256x128xbf16>, vector<8x128xf32> -> vector<8x128xf32>
    %351 = arith.addf %319, %350 : vector<8x128xf32>
    %c0_113 = arith.constant 0 : index
    %c0_114 = arith.constant 0 : index
    %352 = vector.load %arg7[%c0_113, %c0_114] : memref<1x128xf32, #tpu.memory_space<vmem>>, vector<1x128xf32>
    %353 = arith.mulf %351, %351 : vector<8x128xf32>
    %cst_115 = arith.constant dense<0.000000e+00> : vector<8xf32>
    %354 = vector.multi_reduction <add>, %353, %cst_115 [1] : vector<8x128xf32> to vector<8xf32>
    %355 = vector.shape_cast %354 : vector<8xf32> to vector<8x1xf32>
    %cst_116 = arith.constant 1.280000e+02 : f32
    %356 = vector.broadcast %cst_116 : f32 to vector<8x1xf32>
    %357 = arith.divf %355, %356 : vector<8x1xf32>
    %cst_117 = arith.constant 9.99999997E-7 : f32
    %358 = vector.broadcast %cst_117 : f32 to vector<8x1xf32>
    %359 = arith.addf %357, %358 : vector<8x1xf32>
    %360 = math.rsqrt %359 : vector<8x1xf32>
    %361 = vector.broadcast %360 : vector<8x1xf32> to vector<8x128xf32>
    %362 = arith.mulf %351, %361 : vector<8x128xf32>
    %363 = vector.broadcast %352 : vector<1x128xf32> to vector<8x128xf32>
    %364 = arith.mulf %362, %363 : vector<8x128xf32>
    %365 = vector.broadcast %3 : vector<8x1xf32> to vector<8x128xf32>
    %366 = arith.mulf %364, %365 : vector<8x128xf32>
    %cst_118 = arith.constant dense<0.000000e+00> : vector<128xf32>
    %367 = vector.multi_reduction <add>, %366, %cst_118 [0] : vector<8x128xf32> to vector<128xf32>
    %368 = vector.shape_cast %367 : vector<128xf32> to vector<1x128xf32>
    %cst_119 = arith.constant dense<0.000000e+00> : vector<1xf32>
    %369 = vector.multi_reduction <add>, %3, %cst_119 [0] : vector<8x1xf32> to vector<1xf32>
    %370 = vector.shape_cast %369 : vector<1xf32> to vector<1x1xf32>
    %cst_120 = arith.constant 9.99999971E-10 : f32
    %371 = vector.broadcast %cst_120 : f32 to vector<1x1xf32>
    %372 = arith.maximumf %370, %371 : vector<1x1xf32>
    %373 = vector.broadcast %372 : vector<1x1xf32> to vector<1x128xf32>
    %374 = arith.divf %368, %373 : vector<1x128xf32>
    %c0_121 = arith.constant 0 : index
    %c0_122 = arith.constant 0 : index
    %c0_123 = arith.constant 0 : index
    %375 = vector.load %arg12[%c0_121, %c0_122, %c0_123] : memref<1x1x128xf32, #tpu.memory_space<vmem>>, vector<1x1x128xf32>
    %376 = vector.shape_cast %375 : vector<1x1x128xf32> to vector<1x128xf32>
    %377 = vector.shape_cast %374 : vector<1x128xf32> to vector<1x1x128xf32>
    tpu.vector_store %arg12[%c0_121, %c0_122, %c0_123], %377 {strides = array<i32>} : memref<1x1x128xf32, #tpu.memory_space<vmem>>, vector<1x1x128xf32>,
    return
  }
  func.func @transform_0(%arg0: i32) -> (i32, i32, i32) {
    %c0_i32 = arith.constant 0 : i32
    %c0_i32_0 = arith.constant 0 : i32
    %c0_i32_1 = arith.constant 0 : i32
    return %arg0, %c0_i32, %c0_i32_0 : i32, i32, i32
  }
  func.func @transform_1(%arg0: i32) -> (i32, i32, i32) {
    %c0_i32 = arith.constant 0 : i32
    %c0_i32_0 = arith.constant 0 : i32
    %c0_i32_1 = arith.constant 0 : i32
    return %arg0, %c0_i32, %c0_i32_0 : i32, i32, i32
  }
  func.func @transform_2(%arg0: i32) -> (i32, i32) {
    %c0_i32 = arith.constant 0 : i32
    %c0_i32_0 = arith.constant 0 : i32
    %c0_i32_1 = arith.constant 0 : i32
    return %c0_i32, %c0_i32_0 : i32, i32
  }
  func.func @transform_3(%arg0: i32) -> (i32, i32) {
    %c0_i32 = arith.constant 0 : i32
    %c0_i32_0 = arith.constant 0 : i32
    %c0_i32_1 = arith.constant 0 : i32
    return %c0_i32, %c0_i32_0 : i32, i32
  }
  func.func @transform_4(%arg0: i32) -> (i32, i32, i32) {
    %c0_i32 = arith.constant 0 : i32
    %c0_i32_0 = arith.constant 0 : i32
    %c0_i32_1 = arith.constant 0 : i32
    %c0_i32_2 = arith.constant 0 : i32
    return %c0_i32, %c0_i32_0, %c0_i32_1 : i32, i32, i32
  }
  func.func @transform_5(%arg0: i32) -> (i32, i32, i32) {
    %c0_i32 = arith.constant 0 : i32
    %c0_i32_0 = arith.constant 0 : i32
    %c0_i32_1 = arith.constant 0 : i32
    %c0_i32_2 = arith.constant 0 : i32
    return %c0_i32, %c0_i32_0, %c0_i32_1 : i32, i32, i32
  }
  func.func @transform_6(%arg0: i32) -> (i32, i32) {
    %c0_i32 = arith.constant 0 : i32
    %c0_i32_0 = arith.constant 0 : i32
    %c0_i32_1 = arith.constant 0 : i32
    return %c0_i32, %c0_i32_0 : i32, i32
  }
  func.func @transform_7(%arg0: i32) -> (i32, i32, i32) {
    %c0_i32 = arith.constant 0 : i32
    %c0_i32_0 = arith.constant 0 : i32
    %c0_i32_1 = arith.constant 0 : i32
    %c0_i32_2 = arith.constant 0 : i32
    return %c0_i32, %c0_i32_0, %c0_i32_1 : i32, i32, i32
  }
  func.func @transform_8(%arg0: i32) -> (i32, i32, i32) {
    %c0_i32 = arith.constant 0 : i32
    %c0_i32_0 = arith.constant 0 : i32
    %c0_i32_1 = arith.constant 0 : i32
    %c0_i32_2 = arith.constant 0 : i32
    return %c0_i32, %c0_i32_0, %c0_i32_1 : i32, i32, i32
  }
  func.func @transform_9(%arg0: i32) -> (i32, i32, i32) {
    %c0_i32 = arith.constant 0 : i32
    %c0_i32_0 = arith.constant 0 : i32
    %c0_i32_1 = arith.constant 0 : i32
    %c0_i32_2 = arith.constant 0 : i32
    return %c0_i32, %c0_i32_0, %c0_i32_1 : i32, i32, i32
  }
  func.func @transform_10(%arg0: i32) -> (i32, i32, i32) {
    %c0_i32 = arith.constant 0 : i32
    %c0_i32_0 = arith.constant 0 : i32
    %c0_i32_1 = arith.constant 0 : i32
    %c0_i32_2 = arith.constant 0 : i32
    return %c0_i32, %c0_i32_0, %c0_i32_1 : i32, i32, i32
  }
  func.func @transform_11(%arg0: i32) -> (i32, i32, i32) {
    %c0_i32 = arith.constant 0 : i32
    %c0_i32_0 = arith.constant 0 : i32
    %c0_i32_1 = arith.constant 0 : i32
    return %arg0, %c0_i32, %c0_i32_0 : i32, i32, i32
  }
}

</mosaic_0001>

<bundles_post_ra>
// kernel: encoding_model_forward.1
= control target key start
LH: loop header
LB: loop body
LE: loop exit
PB: predicated region body
PF: predicated region fallthrough
CT: control target
= control target key end

     0   :  { %16 = vsyncpa [#allocation3], 0  ;;  %s5617_s0 = inlined_call_operand.vmem [shape: f32[2,8,128], index: 0, kind: input, shape index: {}]   ;;  %s5618_s1 = inlined_call_operand.vmem [shape: f32[2,8,1], index: 1, kind: input, shape index: {}]   ;;  %s5619_s2 = inlined_call_operand.vmem [shape: f32[8,128], index: 2, kind: input, shape index: {}]   ;;  %s5620_s3 = inlined_call_operand.vmem [shape: f32[8,128], index: 3, kind: input, shape index: {}]   ;;  %s5621_s4 = inlined_call_operand.vmem [shape: f32[2,1,128], index: 4, kind: input, shape index: {}]   ;;  %s5622_s5 = inlined_call_operand.vmem [shape: f32[2,1,128], index: 5, kind: input, shape index: {}]   ;;  %s5623_s6 = inlined_call_operand.vmem [shape: f32[1,128], index: 6, kind: input, shape index: {}]   ;;  %s5624_s7 = inlined_call_operand.hbm [shape: bf16[2,128,640], index: 7, kind: input, shape index: {}]   ;;  %s5625_s8 = inlined_call_operand.vmem [shape: bf16[2,128,128], index: 8, kind: input, shape index: {}]   ;;  %s5626_s9 = inlined_call_operand.hbm [shape: bf16[2,128,512], index: 9, kind: input, shape index: {}]   ;;  %s5627_s10 = inlined_call_operand.hbm [shape: bf16[2,256,128], index: 10, kind: input, shape index: {}]   ;;  %s5628_s11 = inlined_call_operand.hbm [shape: f32[2,1,128], index: 11, kind: output, shape index: {}]  }
   0x1   :  { %17 = vsyncpa [#allocation6], 0 }
   0x2   :  { %18 = vsyncpa [#allocation4], 0 }
   0x3   :  { %20 = vsyncpa [#allocation4 + $0x1], 0  ;;  %s5153_s17 = smov 0   ;;  %s5155_s18 = smov 0  }
   0x4   :  { %s5157_s19 = smov 0   ;;  %s5159_s20 = smov 0  }
   0x5 LB: > { %5633 = sst [smem:[#allocation12_spill]] %s5071_s19  ;;  %s5174_s21 = sadd.s32 4294967295, %s5075_s20   ;;  %s5075_s20 = sphi %s5159_s20, %s5645_s20   ;;  %s5071_s19 = sphi %s5157_s19, %s5647_s19   ;;  %s5067_s18 = sphi %s5155_s18, %s5649_s18   ;;  %s5063_s17 = sphi %s5153_s17, %s5648_s17  }
   0x6   : > { %s3949_s22 = sadd.s32 4294967294, %s5075_s20   ;;  %s5178_s23 = sadd.s32 1, %s5075_s20  }
   0x7   : > { %5634 = sst [smem:[#allocation13_spill]] %s5178_s23  ;;  %s274_s24 = sadd.s32 1, %s5071_s19 }
   0x8   : > { %s271_s25 = ssub.s32 %s5075_s20, %s5178_s23  ;;  %p284_p0 = scmp.ne.s32.totalorder %s5071_s19, %s5067_s18 }
   0x9   : > { %p272_p1 = scmp.eq.s32.totalorder %s271_s25, 0  ;;  %p285_p2 = scmp.eq.s32.totalorder %s5174_s21, 1 }
   0xa   : > { %p290_p3 = scmp.ne.s32.totalorder %s5067_s18, %s5063_s17  ;;  %p291_p4 = scmp.eq.s32.totalorder %s3949_s22, 1 }
   0xb   : > { %s5189_s26 = scalar_select %p272_p1, %s5071_s19, %s274_s24  }
   0xc   : > { %p5191_p5 = por %p285_p2, %p284_p0  ;;  %p5195_p6 = por %p291_p4, %p290_p3 }
   0xd   : > { %5635 = sst [smem:[#allocation14_spill]] %s5189_s26  ;;  %p3950_p7 = scmp.ge.s32.totalorder %s5075_s20, 1 }
   0xe   : > { %s5637_s28 = scalar_select %p5195_p6, 1, 0 }
   0xf   : > { %p298_p8 = scmp.lt.s32.totalorder %s5075_s20, 3  ;;  %p5629_p9 = scmp.eq.s32.totalorder %s5174_s21, 0 }
  0x10   : > { %s5077_s30 = smov [#allocation5]   ;;  %s5078_s14 = smov [#allocation2]  }
  0x11   : > { %p5202_p10 = pnand %p3950_p7, %p298_p8  ;;  %s341_s12 = sshll.u32 %s5077_s30, 4  ;;  %s342_s12 = int_to_ptr.vmem [resolvable:$true] %s341_s12 }
  0x12   : > { %s325_s15 = sshll.u32 %s5078_s14, 4  ;;  %s4940_s16 = scalar_lea.vmem %s342_s12, 8192  ;;  %s326_s15 = int_to_ptr.vmem [resolvable:$true] %s325_s15 }
  0x13   : > { %p4539_p11 = pneg %p5202_p10  ;;  %p4941_p0 = scmp.ne.s32.totalorder %s342_s12, %s4940_s16 }
  0x14   : > { %p4948_p3 = scmp.lt.s32.totalorder %s342_s12, %s342_s12  ;;  %p4949_p4 = scmp.lt.s32.totalorder %s4940_s16, %s4940_s16 }
  0x15   : > { %p5210_p12 = pnand %p5629_p9, %p4539_p11 }
  0x16   : > { %p4950_p7 = por %p4949_p4, %p4948_p3 }
  0x17   : > { %p4931_p13 = pneg %p5210_p12 }
  0x19   : > { %p4943_p1 = pnand %p4941_p0, %p4931_p13 }
  0x1b   : > { %p4944_p2 = pneg %p4943_p1 }
  0x1d   : > { %p4951_p8 = pnand %p4950_p7, %p4944_p2 }
  0x1f   : > { %4954 = shalt.err (!%p4951_p8)
}
  0x20   : > { %s5079_s22 = smov 256   ;;  %s5080_s24 = smov 16  }
  0x21   : > { %4545 = dma.hbm_to_vmem [thread:$0]  (!%p5210_p12), %s5626_s9, 8192, %s342_s12, [#allocation6], %s5079_s22, %s5079_s22, %s5080_s24  }
  0x22   : > { %s4966_s14 = scalar_lea.vmem %s326_s15, 10240  ;;  %p4974_p9 = scmp.lt.s32.totalorder %s326_s15, %s326_s15 }
  0x23   : > { %p4967_p11 = scmp.ne.s32.totalorder %s326_s15, %s4966_s14  ;;  %p4975_p6 = scmp.lt.s32.totalorder %s4966_s14, %s4966_s14 }
  0x25   : > { %p4969_p0 = pnand %p4967_p11, %p4931_p13  ;;  %p4976_p3 = por %p4975_p6, %p4974_p9 }
  0x27   : > { %p4970_p1 = pneg %p4969_p0 }
  0x29   : > { %p4977_p2 = pnand %p4976_p3, %p4970_p1 }
  0x2b   : > { %4980 = shalt.err (!%p4977_p2)
}
  0x2c   : > { %s5081_s16 = smov 320   ;;  %s5082_s26 = smov 20  }
  0x2d   : > { %4542 = dma.hbm_to_vmem [thread:$0]  (!%p5210_p12), %s5624_s7, 10240, %s326_s15, [#allocation3], %s5081_s16, %s5081_s16, %s5082_s26  }
  0x2e   : > { %s5083_s12 = smov [#allocation7]  }
  0x2f   : > { %s354_s22 = sshll.u32 %s5083_s12, 4  ;;  %s355_s22 = int_to_ptr.vmem [resolvable:$true] %s354_s22 }
  0x30   : > { %s4992_s24 = scalar_lea.vmem %s355_s22, 4096  ;;  %p5000_p9 = scmp.lt.s32.totalorder %s355_s22, %s355_s22 }
  0x31   : > { %p4993_p4 = scmp.ne.s32.totalorder %s355_s22, %s4992_s24  ;;  %p5001_p8 = scmp.lt.s32.totalorder %s4992_s24, %s4992_s24 }
  0x33   : > { %p4995_p7 = pnand %p4993_p4, %p4931_p13  ;;  %p5002_p11 = por %p5001_p8, %p5000_p9 }
  0x35   : > { %p4996_p6 = pneg %p4995_p7 }
  0x37   : > { %p5003_p0 = pnand %p5002_p11, %p4996_p6 }
  0x39   : > { %5006 = shalt.err (!%p5003_p0)
}
  0x3a   : > { %s5084_s25 = smov 64   ;;  %s5085_s30 = smov 4  }
  0x3b   : > { %4548 = dma.hbm_to_vmem [thread:$0]  (!%p5210_p12), %s5627_s10, 4096, %s355_s22, [#allocation6], %s5084_s25, %s5084_s25, %s5085_s30  }
  0x3c   : > { %384 = sbr.rel (%p5202_p10) target bundleno = 6289 (0x1891), region = 64  ;;  %p5640_p1 = scmp.eq.s32.totalorder (!%p5202_p10), %s5174_s21, 0 }
  0x41   : > { %5050 = dma.done.wait (%p5640_p1), [#allocation3], 10240   ;;  %p5641_p13 = pmov %p5640_p1 }
  0x42   : > { %p5642_p3 = pmov %p5640_p1 }
  0x43   : > { %5052 = vsyncadd (%p5641_p13), [#allocation3], 4294957056 }
  0x44   : > { %5054 = dma.done.wait (%p5642_p3), [#allocation6], 12288   ;;  %p5643_p2 = pmov %p5640_p1 }
  0x45   : > { %p434_p4 = scmp.lt.s32.totalorder %s5174_s21, 1  ;;  %v4609_v2 = vld [vmem:[#allocation2 + $0x11c] ss:$20 sps:$4 sm:$0xff]   ;;  %v4611_v3 = vld [vmem:[#allocation2 + $0x118] ss:$20 sps:$4 sm:$0xff]   ;;  %v5086_v29 = vmov 0  }
  0x46   : > { %5056 = vsyncadd (%p5643_p2), [#allocation6], 4294955008  ;;  %v4612_v4 = vld [vmem:[#allocation2 + $0x124] ss:$20 sps:$4 sm:$0xff]   ;;  %722 = vmatprep.subr.bf16.mxu0 %v4609_v2  ;;  %v4614_v5 = vld [vmem:[#allocation2 + $0x120] ss:$20 sps:$4 sm:$0xff]   ;;  %754 = vmatprep.mubr.bf16.mxu0 %v5086_v29 }
  0x47   : > { %s5252_s26 = scalar_select %p434_p4, %s5174_s21, 1  ;;  %723 = vmatpush1.bf16.msra.mxu0 %v4611_v3  ;;  %763 = vmatprep.subr.bf16.mxu1 %v4612_v4  ;;  %v4615_v6 = vld [vmem:[#allocation2 + $0xf4] ss:$20 sps:$4 sm:$0xff]   ;;  %v4617_v7 = vld [vmem:[#allocation2 + $0xf0] ss:$20 sps:$4 sm:$0xff]   ;;  %v5087_v35 = vmov 0.0  }
  0x48   : > { %764 = vmatpush1.bf16.msra.mxu1 %v4614_v5  ;;  %v4618_v8 = vld [vmem:[#allocation2 + $0xfc] ss:$20 sps:$4 sm:$0xff]   ;;  %v4620_v9 = vld [vmem:[#allocation2 + $0xf8] ss:$20 sps:$4 sm:$0xff]   ;;  %724 = vmatprep.subr.bf16.mxu0 %v4615_v6  ;;  %v4624_v12 = vld [vmem:[#allocation2 + $0xd4] ss:$20 sps:$4 sm:$0xff]  }
  0x49   : > { %s3959_s29 = sshll.u32 %s5252_s26, 3  ;;  %v4621_v10 = vld [vmem:[#allocation2 + $0xcc] ss:$20 sps:$4 sm:$0xff]   ;;  %765 = vmatprep.subr.bf16.mxu1 %v4618_v8  ;;  %v4623_v11 = vld [vmem:[#allocation2 + $0xc8] ss:$20 sps:$4 sm:$0xff]   ;;  %795 = vmatprep.mubr.bf16.mxu1 %v5086_v29  ;;  %vm5088_vm0 = vmmov 0  }
  0x4a   : > { %s5260_s14 = scalar_lea.vmem %s5617_s0, %s3959_s29  ;;  %v4626_v13 = vld [vmem:[#allocation2 + $0xd0] ss:$20 sps:$4 sm:$0xff]   ;;  %v4629_v15 = vld [vmem:[#allocation2 + $0xa0] ss:$20 sps:$4 sm:$0xff]   ;;  %v4632_v17 = vld [vmem:[#allocation2 + $0xa8] ss:$20 sps:$4 sm:$0xff]   ;;  %4607 = vset.pattern.permute.xlu0 %v5086_v29  ;;  %s5277_s22 = scalar_lea.vmem %s5618_s1, %s3959_s29 }
  0x4b   : > { %v5263_v0 = vld [vmem:[%s5260_s14] sm:$0xff]  ;;  %725 = vmatpush1.bf16.msra.mxu0 %v4617_v7  ;;  %v4633_v18 = vld [vmem:[#allocation2 + $0x7c] ss:$20 sps:$4 sm:$0xff]   ;;  %v4635_v19 = vld [vmem:[#allocation2 + $0x78] ss:$20 sps:$4 sm:$0xff]   ;;  %vm869_vm1 = vcmask 261120  }
  0x4c   : > { %v450_v1 = vmul.f32 %v5263_v0, %v5263_v0  ;;  %766 = vmatpush1.bf16.msra.mxu1 %v4620_v9  ;;  %726 = vmatprep.subr.bf16.mxu0 %v4621_v10  ;;  %v4627_v14 = vld [vmem:[#allocation2 + $0xa4] ss:$20 sps:$4 sm:$0xff]   ;;  %v4630_v16 = vld [vmem:[#allocation2 + $0xac] ss:$20 sps:$4 sm:$0xff]   ;;  %v4639_v22 = vld [vmem:[#allocation2 + $0x54] ss:$20 sps:$4 sm:$0xff]  }
  0x4d   : > { %767 = vmatprep.subr.bf16.mxu1 %v4624_v12  ;;  %v4636_v20 = vld [vmem:[#allocation2 + $0x84] ss:$20 sps:$4 sm:$0xff]   ;;  %v4638_v21 = vld [vmem:[#allocation2 + $0x80] ss:$20 sps:$4 sm:$0xff]   ;;  %v4642_v23 = vld [vmem:[#allocation2 + $0x5c] ss:$20 sps:$4 sm:$0xff]  }
  0x4e   : > { %451 = vadd.xlane.f32.xlu0 %v450_v1  ;;  %v4641_v24 = vld [vmem:[#allocation2 + $0x50] ss:$20 sps:$4 sm:$0xff]   ;;  %v4644_v25 = vld [vmem:[#allocation2 + $0x58] ss:$20 sps:$4 sm:$0xff]   ;;  %v4648_v27 = vld [vmem:[#allocation2 + $0x34] ss:$20 sps:$4 sm:$0xff]  }
  0x4f   : > { %727 = vmatpush1.bf16.msra.mxu0 %v4623_v11  ;;  %v4645_v26 = vld [vmem:[#allocation2 + $0x2c] ss:$20 sps:$4 sm:$0xff]   ;;  %v4647_v28 = vld [vmem:[#allocation2 + $0x28] ss:$20 sps:$4 sm:$0xff]   ;;  %v4650_v30 = vld [vmem:[#allocation2 + $0x30] ss:$20 sps:$4 sm:$0xff]  }
  0x50   : > { %768 = vmatpush1.bf16.msra.mxu1 %v4626_v13  ;;  %728 = vmatprep.subr.bf16.mxu0 %v4627_v14  ;;  %v4651_v31 = vld [vmem:[#allocation2 + $0x4] ss:$20 sps:$4 sm:$0xff]   ;;  %v4654_v32 = vld [vmem:[#allocation2 + $0xc] ss:$20 sps:$4 sm:$0xff]   ;;  %v4656_v34 = vld [vmem:[#allocation2 + $0x8] ss:$20 sps:$4 sm:$0xff]  }
  0x51   : > { %769 = vmatprep.subr.bf16.mxu1 %v4630_v16  ;;  %v4653_v33 = vld [vmem:[#allocation2] ss:$20 sps:$4 sm:$0xff]   ;;  %v4657_v46 = vld [vmem:[#allocation2 + $0x128] ss:$20 sps:$4 sm:$0xff]   ;;  %v4659_v49 = vld [vmem:[#allocation2 + $0xd8] ss:$20 sps:$4 sm:$0xff]  }
  0x52   : > { %v444_v36 = vld [vmem:[%s5277_s22] sm:$0xff]  ;;  %v4661_v51 = vld [vmem:[#allocation2 + $0x88] ss:$20 sps:$4 sm:$0xff]   ;;  %v4663_v53 = vld [vmem:[#allocation2 + $0x38] ss:$20 sps:$4 sm:$0xff]   ;;  %s5089_s29 = smov 64  }
  0x53   : > { %729 = vmatpush1.bf16.msra.mxu0 %v4629_v15  ;;  %v445_v37 = vsub.f32 1.0, %v444_v36  ;;  %v3961_v43 = vld [vmem:[%s5621_s4] ss:$0 sm:$0xff]  ;;  %v4660_v50 = vld [vmem:[#allocation2 + $0xb0] ss:$20 sps:$4 sm:$0xff]   ;;  %vm963_vm2 = vcmask 1043456  }
  0x54   : > { %770 = vmatpush1.bf16.msra.mxu1 %v4632_v17  ;;  %730 = vmatprep.subr.bf16.mxu0 %v4633_v18  ;;  %v4658_v48 = vld [vmem:[#allocation2 + $0x100] ss:$20 sps:$4 sm:$0xff]   ;;  %v4664_v54 = vld [vmem:[#allocation2 + $0x10] ss:$20 sps:$4 sm:$0xff]   ;;  %s5090_s13 = smov 32   ;;  %vm923_vm3 = vcmask 64512  }
  0x55   : > { %771 = vmatprep.subr.bf16.mxu1 %v4636_v20  ;;  %v446_v38 = vmul.f32 -1e+09, %v445_v37  ;;  %v4662_v52 = vld [vmem:[#allocation2 + $0x60] ss:$20 sps:$4 sm:$0xff]   ;;  %s5091_s15 = smov 96   ;;  %vm3821_vm4 = vcmask 7168  }
  0x56   : > { %v447_v55 = vld [vmem:[%s5619_s2] sm:$0xff]  ;;  %s432_s12 = sand.u32 1, %s5067_s18   ;;  %s4204_s24 = sshll.u32 %s5174_s21, 4 }
  0x57   : > { %731 = vmatpush1.bf16.msra.mxu0 %v4635_v19  ;;  %v448_v58 = vld [vmem:[%s5620_s3] sm:$0xff]  ;;  %s433_s25 = scalar_lea.vmem [#allocation8], %s432_s12  ;;  %s3849_s23 = scalar_lea.hbm %s5628_s11, %s4204_s24 }
  0x58   : > { %772 = vmatpush1.bf16.msra.mxu1 %v4638_v21  ;;  %732 = vmatprep.subr.bf16.mxu0 %v4639_v22  ;;  %s3851_s30 = sshll.u32 %s433_s25, 4  ;;  %s3839_s26 = scalar_lea.sflag [#allocation4], %s432_s12  ;;  %s3852_s30 = int_to_ptr.vmem [resolvable:$true] %s3851_s30 }
  0x59   : > { %773 = vmatprep.subr.bf16.mxu1 %v4642_v23 }
  0x5b   : > { %733 = vmatpush1.bf16.msra.mxu0 %v4641_v24 }
  0x5c   : > { %774 = vmatpush1.bf16.msra.mxu1 %v4644_v25  ;;  %734 = vmatprep.subr.bf16.mxu0 %v4645_v26 }
  0x5d   : > { %775 = vmatprep.subr.bf16.mxu1 %v4648_v27 }
  0x5f   : > { %735 = vmatpush1.bf16.msra.mxu0 %v4647_v28 }
  0x60   : > { %776 = vmatpush1.bf16.msra.mxu1 %v4650_v30  ;;  %736 = vmatprep.subr.bf16.mxu0 %v4651_v31 }
  0x61   : > { %777 = vmatprep.subr.bf16.mxu1 %v4654_v32 }
  0x63   : > { %737 = vmatpush1.bf16.msra.mxu0 %v4653_v33 }
  0x64   : > { %778 = vmatpush1.bf16.msra.mxu1 %v4656_v34  ;;  %4325 = vmatprep.subr.bf16.mxu0 %v5087_v35 }
  0x65   : > { %4345 = vmatprep.subr.bf16.mxu1 %v5087_v35  ;;  %919 = vperm.xlu0 %4607, %v446_v38  }
  0xd7   : > { %v452_v39 = vpop.xlane.xlu0 %451 }
  0xd8   : > { %v454_v40 = vmul.f32 0.0078125, %v452_v39 }
  0xda   : > { %v455_v41 = vadd.f32 1e-06, %v454_v40 }
  0xdc   : > { %4865 = vrsqrt.f32 %v455_v41 }
  0xe0   : > { %v5323_v18 = vpop.permute.xlu0 %919 }
  0xe9   : > { %v4866_v42 = vpop.eup %4865 }
  0xea   : > { %v457_v44 = vmul.f32 %v4866_v42, %v5263_v0 }
  0xec   : > { %v464_v45 = vmul.f32 %v3961_v43, %v457_v44 }
  0xee   : > { %v465_v47 = vpack.c.bf16 %v464_v45, %v464_v45  ;;  %v4665_v45 = vld [vmem:[%s5625_s8 + $0x8] sm:$0xff]  }
  0xf0   : > { %755 = vmatmul.mubr.bf16.vlgmr.msra.gmra.mxu0 %v465_v47  ;;  %796 = vmatmul.mubr.bf16.vlgmr.msra.gmra.mxu1 %v465_v47 }
  0xf1   : > { %4326 = vmatpush3.bf16.msra.mxu0 %v4657_v46  ;;  %4341 = vmatprep.mubr.msk.bf16.mxu0 %vm5088_vm0, %v5087_v35 }
  0xf2   : > { %4327 = vmatprep.subr.bf16.mxu0 %v5087_v35  ;;  %4347 = vmatprep.mubr.msk.bf16.mxu1 %vm5088_vm0, %v5087_v35 }
  0xf5   : > { %4328 = vmatpush3.bf16.msra.mxu0 %v4658_v48 }
  0xf6   : > { %4329 = vmatprep.subr.bf16.mxu0 %v5087_v35 }
  0xf9   : > { %4330 = vmatpush3.bf16.msra.mxu0 %v4659_v49 }
  0xfa   : > { %4331 = vmatprep.subr.bf16.mxu0 %v5087_v35 }
  0xfd   : > { %4332 = vmatpush3.bf16.msra.mxu0 %v4660_v50 }
  0xfe   : > { %4333 = vmatprep.subr.bf16.mxu0 %v5087_v35 }
 0x101   : > { %4334 = vmatpush3.bf16.msra.mxu0 %v4661_v51 }
 0x102   : > { %4335 = vmatprep.subr.bf16.mxu0 %v5087_v35 }
 0x105   : > { %4336 = vmatpush3.bf16.msra.mxu0 %v4662_v52 }
 0x106   : > { %4337 = vmatprep.subr.bf16.mxu0 %v5087_v35 }
 0x109   : > { %4338 = vmatpush3.bf16.msra.mxu0 %v4663_v53 }
 0x10a   : > { %4339 = vmatprep.subr.bf16.mxu0 %v5087_v35 }
 0x10d   : > { %4340 = vmatpush3.bf16.msra.mxu0 %v4664_v54 }
 0x10e   : > { %4397 = vmatprep.subr.bf16.mxu0 %v5087_v35 }
 0x110   : > { %4342 = vmatmul.mubr.bf16.vlgmr.msra.gmra.mxu0 %v465_v47  ;;  %v4666_v47 = vld [vmem:[%s5625_s8] sm:$0xff]  }
 0x111   : > { %4401 = vmatprep.mubr.msk.bf16.mxu0 %vm5088_vm0, %v5087_v35 }
 0x1b0   : > { %v756_v56 = vpop.f32.mrf.mxu0  ;;  %v797_v57 = vpop.f32.mrf.mxu1 }
 0x1b1   : > { %v844_v61 = vmul.f32 %v756_v56, %v447_v55  ;;  %v847_v6 = vmul.f32 %v797_v57, %v447_v55 }
 0x1b2   : > { %v758_v59 = vpop.f32.mrf.mxu0  ;;  %v799_v60 = vpop.f32.mrf.mxu1 }
 0x1b3   : > { %v845_v62 = vmul.f32 %v758_v59, %v448_v58  ;;  %v848_v5 = vmul.f32 %v799_v60, %v448_v58 }
 0x1b4   : > { %v760_v63 = vpop.f32.mrf.mxu0  ;;  %v801_v0 = vpop.f32.mrf.mxu1 }
 0x1b5   : > { %v846_v1 = vadd.f32 %v845_v62, %v844_v61  ;;  %v849_v8 = vadd.f32 %v848_v5, %v847_v6 }
 0x1b6   : > { %v761_v2 = vpop.f32.mrf.mxu0  ;;  %v802_v3 = vpop.f32.mrf.mxu1 }
 0x1b7   : > { %v5304_v4 = vpack.c.bf16 %v846_v1, %v846_v1  ;;  %v5311_v9 = vpack.c.bf16 %v849_v8, %v849_v8 }
 0x1b9   : > { %1262 = vrot.lane.b32.xlu0 %v5304_v4, %s5089_s29  ;;  %v874_v7 = vsel %vm869_vm1, %v5304_v4, 0 }
 0x1ba   : > { %4346 = vmatpush3.bf16.xpose.msra.mxu1 %v874_v7 }
 0x1bb   : > { %4351 = vmatprep.subr.bf16.mxu1 %v5087_v35 }
 0x1c1   : > { %4348 = vmatmul.mubr.msk.bf16.vlgmr.msra.gmra.mxu1 %vm869_vm1, %v5311_v9 }
 0x1c2   : > { %4353 = vmatprep.mubr.msk.bf16.mxu1 %vm5088_vm0, %v5087_v35 }
 0x1d0   : > { %v838_v10 = vpop.f32.mrf.mxu0 }
 0x1d1   : > { %v868_v11 = vpack.c.bf16 %v838_v10, %v838_v10 }
 0x1d2   : > { %v4343_v12 = vpop.f32.mrf.mxu0 }
 0x1d3   : > { %1348 = vrot.lane.b32.xlu0 %v868_v11, %s5089_s29  ;;  %v965_v13 = vsel %vm963_vm2, %v868_v11, 0 }
 0x1d4   : > { %v841_v14 = vpop.f32.mrf.mxu0  ;;  %4352 = vmatpush3.bf16.msra.mxu1 %v965_v13 }
 0x1d5   : > { %4357 = vmatprep.subr.bf16.mxu1 %v5087_v35 }
 0x1d6   : > { %v4344_v15 = vpop.f32.mrf.mxu0 }
 0x1d7   : > { %1453 = vrot.lane.b32.xlu0 %v5311_v9, %s5090_s13 }
 0x1db   : > { %1541 = vrot.lane.b32.xlu0 %v868_v11, %s5090_s13 }
 0x281   : > { %v910_v16 = vpop.f32.mrf.mxu1 }
 0x282   : > { %v916_v17 = vmul.f32 0.17677669, %v910_v16 }
 0x283   : > { %v4349_v19 = vpop.f32.mrf.mxu1 }
 0x284   : > { %v922_v20 = vadd.f32 %v5323_v18, %v916_v17 }
 0x285   : > { %v913_v21 = vpop.f32.mrf.mxu1 }
 0x286   : > { %v924_v22 = vsel %vm923_vm3, %v922_v20, -inf }
 0x287   : > { %v925_v23 = vrot.slane %v924_v22, 4  ;;  %v4350_v24 = vpop.f32.mrf.mxu1 }
 0x289   : > { %v926_v25 = vmax.f32 %v924_v22, %v925_v23 }
 0x28b   : > { %v927_v26 = vrot.slane %v926_v25, 2 }
 0x28d   : > { %v928_v27 = vmax.f32 %v926_v25, %v927_v26 }
 0x28f   : > { %v929_v28 = vrot.slane %v928_v27, 1 }
 0x291   : > { %v930_v30 = vmax.f32 %v928_v27, %v929_v28  ;;  %v4667_v27 = vld [vmem:[%s5625_s8 + $0x18] sm:$0xff]  }
 0x293   : > { %v931_v31 = vsub.f32 %v922_v20, %v930_v30  ;;  %v4668_v30 = vld [vmem:[%s5625_s8 + $0x10] sm:$0xff]  }
 0x295   : > { %v932_v32 = vmul.f32 1.442695, %v931_v31 }
 0x297   : > { %4867 = vpow2.f32 %v932_v32 }
 0x2a4   : > { %v4868_v33 = vpop.eup %4867 }
 0x2a5   : > { %v934_v34 = vsel %vm923_vm3, %v4868_v33, 0.0 }
 0x2a6   : > { %v935_v36 = vrot.slane %v934_v34, 4 }
 0x2a8   : > { %v936_v37 = vadd.f32 %v935_v36, %v934_v34 }
 0x2aa   : > { %v937_v38 = vrot.slane %v936_v37, 2 }
 0x2ac   : > { %v938_v39 = vadd.f32 %v937_v38, %v936_v37 }
 0x2ae   : > { %v939_v40 = vrot.slane %v938_v39, 1 }
 0x2b0   : > { %v940_v41 = vadd.f32 %v939_v40, %v938_v39  ;;  %v4925_v40 = vld [vmem:[%s5260_s14] sm:$0xff]  ;;  %s5007_s14 = scalar_lea.vmem %s3852_s30, 16 }
 0x2b1   : > { %p5008_p10 = scmp.ne.s32.totalorder %s3852_s30, %s5007_s14 }
 0x2b2   : > { %4869 = vrcp.f32 %v940_v41 }
 0x2b3   : > { %p5009_p12 = pnand %p5008_p10, %p5191_p5 }
 0x2b5   : > { %p5010_p7 = pneg %p5009_p12 }
 0x2bf   : > { %v4870_v42 = vpop.eup %4869 }
 0x2c0   : > { %v942_v43 = vmul.f32 %v4870_v42, %v4868_v33 }
 0x2c2   : > { %v943_v44 = vpack.c.bf16 %v942_v43, %v942_v43 }
 0x2c4   : > { %944 = vxpose.xlu1.c.b16.start.end [1/1] (short) (narrow) %v943_v44, 16 }
 0x2c8   : > { %1068 = vrot.lane.b32.xlu1 %v5304_v4, %s5091_s15 }
 0x2cc   : > { %1065 = vrot.lane.b32.xlu1 %v5311_v9, %s5091_s15 }
 0x2d0   : > { %1155 = vrot.lane.b32.xlu1 %v868_v11, %s5091_s15 }
 0x326   : > { %v952_v46 = vpop.trf.xlu1 }
 0x327   : > { %4354 = vmatmul.mubr.msk.bf16.vlgmr.msra.gmra.mxu1 %vm923_vm3, %v952_v46 }
 0x328   : > { %4358 = vmatpush3.bf16.msra.mxu1 %v4665_v45  ;;  %4361 = vmatprep.mubr.msk.bf16.mxu1 %vm5088_vm0, %v5087_v35 }
 0x329   : > { %4359 = vmatprep.subr.bf16.mxu1 %v5087_v35 }
 0x32c   : > { %4360 = vmatpush3.bf16.msra.mxu1 %v4666_v47 }
 0x32d   : > { %4365 = vmatprep.subr.bf16.mxu1 %v5087_v35 }
 0x33a   : > { %v1069_v48 = vpop.permute.xlu1 %1068 }
 0x33b   : > { %v1074_v53 = vsel %vm869_vm1, %v1069_v48, 0 }
 0x33e   : > { %v1066_v51 = vpop.permute.xlu1 %1065 }
 0x342   : > { %v1156_v56 = vpop.permute.xlu1 %1155 }
 0x343   : > { %v1161_v57 = vsel %vm963_vm2, %v1156_v56, 0 }
 0x3e7   : > { %v1001_v49 = vpop.f32.mrf.mxu1 }
 0x3e8   : > { %v1007_v50 = vpack.c.bf16 %v1001_v49, %v1001_v49 }
 0x3e9   : > { %v4355_v52 = vpop.f32.mrf.mxu1 }
 0x3ea   : > { %4362 = vmatmul.mubr.msk.bf16.vlgmr.msra.gmra.mxu1 %vm869_vm1, %v1007_v50 }
 0x3eb   : > { %4366 = vmatpush3.bf16.xpose.msra.mxu1 %v1074_v53  ;;  %v1004_v54 = vpop.f32.mrf.mxu1  ;;  %4367 = vmatprep.mubr.msk.bf16.mxu1 %vm5088_vm0, %v5087_v35 }
 0x3ec   : > { %4371 = vmatprep.subr.bf16.mxu1 %v5087_v35 }
 0x3ed   : > { %v4356_v55 = vpop.f32.mrf.mxu1 }
 0x3f2   : > { %4368 = vmatmul.mubr.msk.bf16.vlgmr.msra.gmra.mxu1 %vm869_vm1, %v1066_v51 }
 0x3f3   : > { %4372 = vmatpush3.bf16.msra.mxu1 %v1161_v57  ;;  %4373 = vmatprep.mubr.msk.bf16.mxu1 %vm5088_vm0, %v5087_v35 }
 0x3f4   : > { %4377 = vmatprep.subr.bf16.mxu1 %v5087_v35 }
 0x4aa   : > { %v5354_v58 = vpop.f32.mrf.mxu1 }
 0x4ab   : > { %v1063_v41 = vadd.f32 %v4925_v40, %v5354_v58 }
 0x4ac   : > { %v4363_v59 = vpop.f32.mrf.mxu1 }
 0x4ae   : > { %v1060_v60 = vpop.f32.mrf.mxu1 }
 0x4b0   : > { %v4364_v61 = vpop.f32.mrf.mxu1 }
 0x4b2   : > { %v1110_v62 = vpop.f32.mrf.mxu1 }
 0x4b3   : > { %v1116_v63 = vmul.f32 0.17677669, %v1110_v62 }
 0x4b4   : > { %v4369_v0 = vpop.f32.mrf.mxu1 }
 0x4b5   : > { %v1117_v1 = vadd.f32 %v1116_v63, %v5323_v18 }
 0x4b6   : > { %v1113_v2 = vpop.f32.mrf.mxu1 }
 0x4b7   : > { %v1118_v3 = vsel %vm923_vm3, %v1117_v1, -inf }
 0x4b8   : > { %v1119_v5 = vrot.slane %v1118_v3, 4  ;;  %v4370_v6 = vpop.f32.mrf.mxu1 }
 0x4b9   : > { %v4669_v6 = vld [vmem:[%s5625_s8 + $0x28] sm:$0xff]  }
 0x4ba   : > { %v1120_v7 = vmax.f32 %v1118_v3, %v1119_v5  ;;  %4398 = vmatpush3.bf16.msra.mxu0 %v4669_v6  ;;  %v4684_v6 = vld [vmem:[#allocation5 + $0xcc] ss:$16 sps:$4 sm:$0xff]  }
 0x4bb   : > { %4399 = vmatprep.subr.bf16.mxu0 %v5087_v35 }
 0x4bc   : > { %v1121_v8 = vrot.slane %v1120_v7, 2 }
 0x4be   : > { %v1122_v10 = vmax.f32 %v1120_v7, %v1121_v8  ;;  %v4670_v8 = vld [vmem:[%s5625_s8 + $0x20] sm:$0xff]  }
 0x4bf   : > { %4400 = vmatpush3.bf16.msra.mxu0 %v4670_v8  ;;  %v4682_v8 = vld [vmem:[#allocation5 + $0xc8] ss:$16 sps:$4 sm:$0xff]  }
 0x4c0   : > { %v1123_v11 = vrot.slane %v1122_v10, 1  ;;  %4411 = vmatprep.subr.bf16.mxu0 %v5087_v35 }
 0x4c2   : > { %v1124_v12 = vmax.f32 %v1122_v10, %v1123_v11 }
 0x4c4   : > { %v1125_v13 = vsub.f32 %v1117_v1, %v1124_v12 }
 0x4c6   : > { %v1126_v14 = vmul.f32 1.442695, %v1125_v13 }
 0x4c8   : > { %4871 = vpow2.f32 %v1126_v14 }
 0x4d5   : > { %v4872_v15 = vpop.eup %4871 }
 0x4d6   : > { %v1128_v16 = vsel %vm923_vm3, %v4872_v15, 0.0 }
 0x4d7   : > { %v1129_v17 = vrot.slane %v1128_v16, 4 }
 0x4d9   : > { %v1130_v19 = vadd.f32 %v1129_v17, %v1128_v16 }
 0x4db   : > { %v1131_v20 = vrot.slane %v1130_v19, 2 }
 0x4dd   : > { %v1132_v21 = vadd.f32 %v1131_v20, %v1130_v19 }
 0x4df   : > { %v1133_v22 = vrot.slane %v1132_v21, 1 }
 0x4e1   : > { %v1134_v23 = vadd.f32 %v1133_v22, %v1132_v21 }
 0x4e3   : > { %4873 = vrcp.f32 %v1134_v23 }
 0x4f0   : > { %v4874_v24 = vpop.eup %4873 }
 0x4f1   : > { %v1136_v25 = vmul.f32 %v4874_v24, %v4872_v15 }
 0x4f3   : > { %v1137_v26 = vpack.c.bf16 %v1136_v25, %v1136_v25 }
 0x4f5   : > { %1138 = vxpose.xlu1.c.b16.start.end [1/1] (short) (narrow) %v1137_v26, 16 }
 0x4f9   : > { %1260 = vrot.lane.b32.xlu1 %v5311_v9, %s5089_s29 }
 0x4fd   : > { %1455 = vrot.lane.b32.xlu1 %v5304_v4, %s5090_s13  ;;  %v1263_v4 = vpop.permute.xlu0 %1262 }
 0x4fe   : > { %v1268_v33 = vsel %vm869_vm1, %v1263_v4, 0 }
 0x501   : > { %v1349_v37 = vpop.permute.xlu0 %1348 }
 0x502   : > { %v1354_v39 = vsel %vm963_vm2, %v1349_v37, 0 }
 0x505   : > { %v1454_v16 = vpop.permute.xlu0 %1453 }
 0x509   : > { %v1542_v17 = vpop.permute.xlu0 %1541 }
 0x50a   : > { %v1547_v22 = vsel %vm963_vm2, %v1542_v17, 0  ;;  %v4690_v17 = vld [vmem:[#allocation5 + $0xac] ss:$16 sps:$4 sm:$0xff]  }
 0x557   : > { %v1146_v28 = vpop.trf.xlu1 }
 0x558   : > { %4374 = vmatmul.mubr.msk.bf16.vlgmr.msra.gmra.mxu1 %vm923_vm3, %v1146_v28 }
 0x559   : > { %4378 = vmatpush3.bf16.msra.mxu1 %v4667_v27  ;;  %4381 = vmatprep.mubr.msk.bf16.mxu1 %vm5088_vm0, %v5087_v35 }
 0x55a   : > { %4379 = vmatprep.subr.bf16.mxu1 %v5087_v35 }
 0x55d   : > { %4380 = vmatpush3.bf16.msra.mxu1 %v4668_v30 }
 0x55e   : > { %4385 = vmatprep.subr.bf16.mxu1 %v5087_v35 }
 0x56b   : > { %v1261_v38 = vpop.permute.xlu1 %1260 }
 0x56f   : > { %v1456_v13 = vpop.permute.xlu1 %1455 }
 0x570   : > { %v1461_v15 = vsel %vm869_vm1, %v1456_v13, 0 }
 0x618   : > { %v1197_v9 = vpop.f32.mrf.mxu1 }
 0x619   : > { %v1203_v31 = vpack.c.bf16 %v1197_v9, %v1197_v9 }
 0x61a   : > { %v4375_v32 = vpop.f32.mrf.mxu1 }
 0x61b   : > { %4382 = vmatmul.mubr.msk.bf16.vlgmr.msra.gmra.mxu1 %vm869_vm1, %v1203_v31 }
 0x61c   : > { %4386 = vmatpush3.bf16.xpose.msra.mxu1 %v1268_v33  ;;  %v1200_v34 = vpop.f32.mrf.mxu1  ;;  %4387 = vmatprep.mubr.msk.bf16.mxu1 %vm5088_vm0, %v5087_v35 }
 0x61d   : > { %4391 = vmatprep.subr.bf16.mxu1 %v5087_v35 }
 0x61e   : > { %v4376_v36 = vpop.f32.mrf.mxu1 }
 0x623   : > { %4388 = vmatmul.mubr.msk.bf16.vlgmr.msra.gmra.mxu1 %vm869_vm1, %v1261_v38 }
 0x624   : > { %4392 = vmatpush3.bf16.msra.mxu1 %v1354_v39  ;;  %4393 = vmatprep.mubr.msk.bf16.mxu1 %vm5088_vm0, %v5087_v35 }
 0x625   : > { %4405 = vmatprep.subr.bf16.mxu1 %v5087_v35 }
 0x6db   : > { %v1253_v42 = vpop.f32.mrf.mxu1 }
 0x6dc   : > { %v5386_v43 = vadd.f32 %v1253_v42, %v1063_v41 }
 0x6dd   : > { %v4383_v44 = vpop.f32.mrf.mxu1 }
 0x6df   : > { %v1256_v45 = vpop.f32.mrf.mxu1 }
 0x6e1   : > { %v4384_v46 = vpop.f32.mrf.mxu1 }
 0x6e3   : > { %v1304_v47 = vpop.f32.mrf.mxu1 }
 0x6e4   : > { %v1310_v48 = vmul.f32 0.17677669, %v1304_v47 }
 0x6e5   : > { %v4389_v49 = vpop.f32.mrf.mxu1 }
 0x6e6   : > { %v1311_v50 = vadd.f32 %v1310_v48, %v5323_v18 }
 0x6e7   : > { %v1307_v51 = vpop.f32.mrf.mxu1 }
 0x6e8   : > { %v1312_v52 = vsel %vm923_vm3, %v1311_v50, -inf }
 0x6e9   : > { %v1313_v53 = vrot.slane %v1312_v52, 4  ;;  %v4390_v54 = vpop.f32.mrf.mxu1 }
 0x6eb   : > { %v1314_v55 = vmax.f32 %v1312_v52, %v1313_v53  ;;  %v4671_v52 = vld [vmem:[%s5625_s8 + $0x38] sm:$0xff]  }
 0x6ed   : > { %v1315_v56 = vrot.slane %v1314_v55, 2 }
 0x6ef   : > { %v1316_v57 = vmax.f32 %v1314_v55, %v1315_v56 }
 0x6f1   : > { %v1317_v58 = vrot.slane %v1316_v57, 1 }
 0x6f3   : > { %v1318_v59 = vmax.f32 %v1316_v57, %v1317_v58 }
 0x6f5   : > { %v1319_v60 = vsub.f32 %v1311_v50, %v1318_v59  ;;  %v4672_v59 = vld [vmem:[%s5625_s8 + $0x30] sm:$0xff]  }
 0x6f7   : > { %v1320_v61 = vmul.f32 1.442695, %v1319_v60 }
 0x6f9   : > { %4875 = vpow2.f32 %v1320_v61 }
 0x706   : > { %v4876_v62 = vpop.eup %4875 }
 0x707   : > { %v1322_v63 = vsel %vm923_vm3, %v4876_v62, 0.0 }
 0x708   : > { %v1323_v0 = vrot.slane %v1322_v63, 4 }
 0x70a   : > { %v1324_v1 = vadd.f32 %v1323_v0, %v1322_v63 }
 0x70c   : > { %v1325_v2 = vrot.slane %v1324_v1, 2 }
 0x70e   : > { %v1326_v3 = vadd.f32 %v1325_v2, %v1324_v1  ;;  %v4673_v1 = vld [vmem:[#allocation5 + $0xe0] ss:$16 sps:$4 sm:$0xff]   ;;  %v4675_v2 = vld [vmem:[#allocation5 + $0xe4] ss:$16 sps:$4 sm:$0xff]  }
 0x710   : > { %v1327_v5 = vrot.slane %v1326_v3, 1 }
 0x712   : > { %v1328_v7 = vadd.f32 %v1327_v5, %v1326_v3  ;;  %v4678_v3 = vld [vmem:[#allocation5 + $0xec] ss:$16 sps:$4 sm:$0xff]   ;;  %v4681_v5 = vld [vmem:[#allocation5 + $0xc4] ss:$16 sps:$4 sm:$0xff]  }
 0x714   : > { %4877 = vrcp.f32 %v1328_v7  ;;  %v4679_v7 = vld [vmem:[#allocation5 + $0xc0] ss:$16 sps:$4 sm:$0xff]  }
 0x721   : > { %v4878_v10 = vpop.eup %4877 }
 0x722   : > { %v1330_v11 = vmul.f32 %v4878_v10, %v4876_v62 }
 0x724   : > { %v1331_v12 = vpack.c.bf16 %v1330_v11, %v1330_v11 }
 0x726   : > { %1332 = vxpose.xlu1.c.b16.start.end [1/1] (short) (narrow) %v1331_v12, 16 }
 0x788   : > { %v1340_v14 = vpop.trf.xlu1 }
 0x789   : > { %4394 = vmatmul.mubr.msk.bf16.vlgmr.msra.gmra.mxu1 %vm923_vm3, %v1340_v14 }
 0x78a   : > { %4406 = vmatpush3.bf16.xpose.msra.mxu1 %v1461_v15  ;;  %4407 = vmatprep.mubr.msk.bf16.mxu1 %vm5088_vm0, %v5087_v35 }
 0x78b   : > { %4417 = vmatprep.subr.bf16.mxu1 %v5087_v35 }
 0x791   : > { %4408 = vmatmul.mubr.msk.bf16.vlgmr.msra.gmra.mxu1 %vm869_vm1, %v1454_v16  ;;  %v4687_v16 = vld [vmem:[#allocation5 + $0xa4] ss:$16 sps:$4 sm:$0xff]  }
 0x792   : > { %4421 = vmatprep.mubr.msk.bf16.mxu1 %vm5088_vm0, %v5087_v35  ;;  %4418 = vmatpush3.bf16.msra.mxu1 %v4671_v52  ;;  %v4723_v52 = vld [vmem:[#allocation7 + $0x70] sm:$0xff]  }
 0x793   : > { %4419 = vmatprep.subr.bf16.mxu1 %v5087_v35 }
 0x796   : > { %4420 = vmatpush3.bf16.msra.mxu1 %v4672_v59  ;;  %v4730_v59 = vld [vmem:[#allocation7 + $0x18] sm:$0xff]  }
 0x797   : > { %1895 = vmatprep.subr.bf16.mxu1 %v4678_v3 }
 0x849   : > { %v1390_v19 = vpop.f32.mrf.mxu1 }
 0x84a   : > { %v1396_v20 = vpack.c.bf16 %v1390_v19, %v1390_v19  ;;  %v4685_v19 = vld [vmem:[#allocation5 + $0xa0] ss:$16 sps:$4 sm:$0xff]  }
 0x84b   : > { %v4395_v21 = vpop.f32.mrf.mxu1 }
 0x84c   : > { %4402 = vmatmul.mubr.msk.bf16.vlgmr.msra.gmra.mxu0 %vm869_vm1, %v1396_v20  ;;  %v4688_v20 = vld [vmem:[#allocation5 + $0xa8] ss:$16 sps:$4 sm:$0xff]   ;;  %v4693_v21 = vld [vmem:[#allocation5 + $0x84] ss:$16 sps:$4 sm:$0xff]  }
 0x84d   : > { %4412 = vmatpush3.bf16.msra.mxu0 %v1547_v22  ;;  %v1393_v23 = vpop.f32.mrf.mxu1  ;;  %4413 = vmatprep.mubr.msk.bf16.mxu0 %vm5088_vm0, %v5087_v35  ;;  %v4696_v22 = vld [vmem:[#allocation5 + $0x8c] ss:$16 sps:$4 sm:$0xff]  }
 0x84e   : > { %1854 = vmatprep.subr.bf16.mxu0 %v4675_v2  ;;  %v4691_v23 = vld [vmem:[#allocation5 + $0x80] ss:$16 sps:$4 sm:$0xff]  }
 0x84f   : > { %v4396_v24 = vpop.f32.mrf.mxu1 }
 0x850   : > { %v4694_v24 = vld [vmem:[#allocation5 + $0x88] ss:$16 sps:$4 sm:$0xff]  }
 0x851   : > { %v1497_v25 = vpop.f32.mrf.mxu1 }
 0x852   : > { %v1503_v26 = vmul.f32 0.17677669, %v1497_v25  ;;  %v4699_v25 = vld [vmem:[#allocation5 + $0x64] ss:$16 sps:$4 sm:$0xff]  }
 0x853   : > { %v4409_v27 = vpop.f32.mrf.mxu1 }
 0x854   : > { %v1504_v28 = vadd.f32 %v1503_v26, %v5323_v18  ;;  %v4702_v26 = vld [vmem:[#allocation5 + $0x6c] ss:$16 sps:$4 sm:$0xff]   ;;  %v4697_v27 = vld [vmem:[#allocation5 + $0x60] ss:$16 sps:$4 sm:$0xff]  }
 0x855   : > { %v1500_v30 = vpop.f32.mrf.mxu1 }
 0x856   : > { %v1505_v4 = vsel %vm923_vm3, %v1504_v28, -inf  ;;  %v4705_v30 = vld [vmem:[#allocation5 + $0x44] ss:$16 sps:$4 sm:$0xff]  }
 0x857   : > { %v1506_v9 = vrot.slane %v1505_v4, 4  ;;  %v4410_v31 = vpop.f32.mrf.mxu1 }
 0x858   : > { %v4706_v31 = vld [vmem:[#allocation5 + $0x48] ss:$16 sps:$4 sm:$0xff]  }
 0x859   : > { %v1507_v32 = vmax.f32 %v1505_v4, %v1506_v9  ;;  %v4708_v4 = vld [vmem:[#allocation5 + $0x4c] ss:$16 sps:$4 sm:$0xff]   ;;  %v4703_v9 = vld [vmem:[#allocation5 + $0x40] ss:$16 sps:$4 sm:$0xff]  }
 0x85b   : > { %v1508_v33 = vrot.slane %v1507_v32, 2 }
 0x85d   : > { %v1509_v34 = vmax.f32 %v1507_v32, %v1508_v33  ;;  %v4711_v32 = vld [vmem:[#allocation5 + $0x24] ss:$16 sps:$4 sm:$0xff]   ;;  %v4714_v33 = vld [vmem:[#allocation5 + $0x2c] ss:$16 sps:$4 sm:$0xff]  }
 0x85f   : > { %v1510_v36 = vrot.slane %v1509_v34, 1 }
 0x861   : > { %v1511_v37 = vmax.f32 %v1509_v34, %v1510_v36  ;;  %v4709_v34 = vld [vmem:[#allocation5 + $0x20] ss:$16 sps:$4 sm:$0xff]   ;;  %v4712_v36 = vld [vmem:[#allocation5 + $0x28] ss:$16 sps:$4 sm:$0xff]  }
 0x863   : > { %v1512_v38 = vsub.f32 %v1504_v28, %v1511_v37  ;;  %v4700_v28 = vld [vmem:[#allocation5 + $0x68] ss:$16 sps:$4 sm:$0xff]   ;;  %v4717_v37 = vld [vmem:[#allocation5 + $0x4] ss:$16 sps:$4 sm:$0xff]  }
 0x865   : > { %v1513_v39 = vmul.f32 1.442695, %v1512_v38  ;;  %v4720_v38 = vld [vmem:[#allocation5 + $0xc] ss:$16 sps:$4 sm:$0xff]  }
 0x867   : > { %4879 = vpow2.f32 %v1513_v39  ;;  %v4715_v39 = vld [vmem:[#allocation5] ss:$16 sps:$4 sm:$0xff]  }
 0x874   : > { %v4880_v40 = vpop.eup %4879 }
 0x875   : > { %v1515_v41 = vsel %vm923_vm3, %v4880_v40, 0.0 }
 0x876   : > { %v1516_v42 = vrot.slane %v1515_v41, 4 }
 0x878   : > { %v1517_v44 = vadd.f32 %v1516_v42, %v1515_v41 }
 0x87a   : > { %v1518_v45 = vrot.slane %v1517_v44, 2 }
 0x87c   : > { %v1519_v46 = vadd.f32 %v1518_v45, %v1517_v44 }
 0x87e   : > { %v1520_v47 = vrot.slane %v1519_v46, 1 }
 0x880   : > { %v1521_v48 = vadd.f32 %v1520_v47, %v1519_v46  ;;  %v4022_v46 = vld [vmem:[%s5622_s5] ss:$0 sm:$0xff] }
 0x882   : > { %4881 = vrcp.f32 %v1521_v48 }
 0x88f   : > { %v4882_v49 = vpop.eup %4881 }
 0x890   : > { %v1523_v50 = vmul.f32 %v4882_v49, %v4880_v40  ;;  %v4718_v40 = vld [vmem:[#allocation5 + $0x8] ss:$16 sps:$4 sm:$0xff]  }
 0x892   : > { %v1524_v51 = vpack.c.bf16 %v1523_v50, %v1523_v50  ;;  %v4721_v50 = vld [vmem:[#allocation7 + $0x78] sm:$0xff]  }
 0x894   : > { %1525 = vxpose.xlu0.c.b16.start.end [1/1] (short) (narrow) %v1524_v51, 16  ;;  %v4722_v51 = vld [vmem:[#allocation7 + $0x38] sm:$0xff]  }
 0x8f6   : > { %v1533_v53 = vpop.trf.xlu0 }
 0x8f7   : > { %4414 = vmatmul.mubr.msk.bf16.vlgmr.msra.gmra.mxu0 %vm923_vm3, %v1533_v53  ;;  %v4724_v53 = vld [vmem:[#allocation7 + $0x30] sm:$0xff]  }
 0x8f8   : > { %1886 = vmatprep.mubr.bf16.mxu0 %v5086_v29  ;;  %1855 = vmatpush1.bf16.msra.mxu0 %v4673_v1  ;;  %v4736_v1 = vld [vmem:[#allocation7] sm:$0xff]  }
 0x8f9   : > { %1856 = vmatprep.subr.bf16.mxu0 %v4681_v5 }
 0x8fc   : > { %1857 = vmatpush1.bf16.msra.mxu0 %v4679_v7 }
 0x8fd   : > { %1858 = vmatprep.subr.bf16.mxu0 %v4687_v16 }
 0x900   : > { %1859 = vmatpush1.bf16.msra.mxu0 %v4685_v19 }
 0x901   : > { %1860 = vmatprep.subr.bf16.mxu0 %v4693_v21 }
 0x904   : > { %1861 = vmatpush1.bf16.msra.mxu0 %v4691_v23 }
 0x905   : > { %1862 = vmatprep.subr.bf16.mxu0 %v4699_v25 }
 0x908   : > { %1863 = vmatpush1.bf16.msra.mxu0 %v4697_v27  ;;  %v4737_v27 = vld [vmem:[#allocation2 + $0x258] ss:$20 sps:$4 sm:$0xff]  }
 0x909   : > { %1864 = vmatprep.subr.bf16.mxu0 %v4705_v30  ;;  %v4740_v30 = vld [vmem:[#allocation2 + $0x260] ss:$20 sps:$4 sm:$0xff]  }
 0x90c   : > { %v1446_v54 = vpop.f32.mrf.mxu0  ;;  %1865 = vmatpush1.bf16.msra.mxu0 %v4703_v9  ;;  %v4745_v9 = vld [vmem:[#allocation2 + $0x234] ss:$20 sps:$4 sm:$0xff]  }
 0x90d   : > { %v1452_v55 = vadd.f32 %v1446_v54, %v5386_v43  ;;  %v4676_v43 = vld [vmem:[#allocation5 + $0xe8] ss:$16 sps:$4 sm:$0xff]   ;;  %1866 = vmatprep.subr.bf16.mxu0 %v4711_v32  ;;  %v4743_v32 = vld [vmem:[#allocation2 + $0x230] ss:$20 sps:$4 sm:$0xff]  }
 0x90e   : > { %v4403_v56 = vpop.f32.mrf.mxu0  ;;  %v4725_v54 = vld [vmem:[#allocation7 + $0x68] sm:$0xff]  }
 0x90f   : > { %v4727_v56 = vld [vmem:[#allocation7 + $0x60] sm:$0xff]  }
 0x910   : > { %v1449_v57 = vpop.f32.mrf.mxu0  ;;  %1867 = vmatpush1.bf16.msra.mxu0 %v4709_v34  ;;  %v4751_v34 = vld [vmem:[#allocation2 + $0x20c] ss:$20 sps:$4 sm:$0xff]  }
 0x911   : > { %1868 = vmatprep.subr.bf16.mxu0 %v4717_v37  ;;  %v4728_v57 = vld [vmem:[#allocation7 + $0x20] sm:$0xff]  }
 0x912   : > { %v4404_v58 = vpop.f32.mrf.mxu0 }
 0x913   : > { %v4729_v58 = vld [vmem:[#allocation7 + $0x58] sm:$0xff]  }
 0x914   : > { %1869 = vmatpush1.bf16.msra.mxu0 %v4715_v39 }
 0x915   : > { %4244 = vmatprep.subr.bf16.mxu0 %v4721_v50  ;;  %v4758_v50 = vld [vmem:[#allocation2 + $0x1e8] ss:$20 sps:$4 sm:$0xff]  }
 0x9b7   : > { %v1583_v60 = vpop.f32.mrf.mxu0 }
 0x9b8   : > { %v1589_v61 = vpack.c.bf16 %v1583_v60, %v1583_v60  ;;  %v4731_v60 = vld [vmem:[#allocation7 + $0x50] sm:$0xff]  }
 0x9b9   : > { %v4415_v62 = vpop.f32.mrf.mxu0 }
 0x9ba   : > { %4422 = vmatmul.mubr.msk.bf16.vlgmr.msra.gmra.mxu1 %vm869_vm1, %v1589_v61  ;;  %v4732_v61 = vld [vmem:[#allocation7 + $0x10] sm:$0xff]   ;;  %v4733_v62 = vld [vmem:[#allocation7 + $0x48] sm:$0xff]  }
 0x9bb   : > { %v1586_v63 = vpop.f32.mrf.mxu0  ;;  %1927 = vmatprep.mubr.bf16.mxu1 %v5086_v29  ;;  %1896 = vmatpush1.bf16.msra.mxu1 %v4676_v43 }
 0x9bc   : > { %1897 = vmatprep.subr.bf16.mxu1 %v4684_v6  ;;  %v4734_v63 = vld [vmem:[#allocation7 + $0x8] sm:$0xff]  }
 0x9bd   : > { %v4416_v0 = vpop.f32.mrf.mxu0 }
 0x9be   : > { %v4735_v0 = vld [vmem:[#allocation7 + $0x40] sm:$0xff]  }
 0x9bf   : > { %1898 = vmatpush1.bf16.msra.mxu1 %v4682_v8 }
 0x9c0   : > { %1899 = vmatprep.subr.bf16.mxu1 %v4690_v17 }
 0x9c3   : > { %1900 = vmatpush1.bf16.msra.mxu1 %v4688_v20 }
 0x9c4   : > { %1901 = vmatprep.subr.bf16.mxu1 %v4696_v22 }
 0x9c7   : > { %1902 = vmatpush1.bf16.msra.mxu1 %v4694_v24 }
 0x9c8   : > { %1903 = vmatprep.subr.bf16.mxu1 %v4702_v26 }
 0x9cb   : > { %1904 = vmatpush1.bf16.msra.mxu1 %v4700_v28  ;;  %v4739_v28 = vld [vmem:[#allocation2 + $0x25c] ss:$20 sps:$4 sm:$0xff]  }
 0x9cc   : > { %1905 = vmatprep.subr.bf16.mxu1 %v4708_v4  ;;  %v4742_v4 = vld [vmem:[#allocation2 + $0x264] ss:$20 sps:$4 sm:$0xff]  }
 0x9cf   : > { %1906 = vmatpush1.bf16.msra.mxu1 %v4706_v31  ;;  %v4748_v31 = vld [vmem:[#allocation2 + $0x23c] ss:$20 sps:$4 sm:$0xff]  }
 0x9d0   : > { %1907 = vmatprep.subr.bf16.mxu1 %v4714_v33  ;;  %v4746_v33 = vld [vmem:[#allocation2 + $0x238] ss:$20 sps:$4 sm:$0xff]  }
 0x9d3   : > { %1908 = vmatpush1.bf16.msra.mxu1 %v4712_v36  ;;  %v4749_v36 = vld [vmem:[#allocation2 + $0x208] ss:$20 sps:$4 sm:$0xff]  }
 0x9d4   : > { %1909 = vmatprep.subr.bf16.mxu1 %v4720_v38 }
 0x9d7   : > { %1910 = vmatpush1.bf16.msra.mxu1 %v4718_v40 }
 0x9d8   : > { %2397 = vmatprep.subr.bf16.mxu1 %v4739_v28  ;;  %v4927_v28 = vld [vmem:[%s5620_s3] sm:$0xff] }
 0xa7a   : > { %v1639_v10 = vpop.f32.mrf.mxu1 }
 0xa7b   : > { %v5426_v11 = vadd.f32 %v1639_v10, %v1452_v55  ;;  %v4726_v55 = vld [vmem:[#allocation7 + $0x28] sm:$0xff]  }
 0xa7c   : > { %v4423_v12 = vpop.f32.mrf.mxu1 }
 0xa7d   : > { %v1647_v13 = vmul.f32 %v5426_v11, %v5426_v11 }
 0xa7e   : > { %v1642_v14 = vpop.f32.mrf.mxu1 }
 0xa7f   : > { %1648 = vadd.xlane.f32.xlu0 %v1647_v13 }
 0xa80   : > { %v4424_v15 = vpop.f32.mrf.mxu1 }
 0xb08   : > { %v1649_v41 = vpop.xlane.xlu0 %1648 }
 0xb09   : > { %v1650_v42 = vmul.f32 0.0078125, %v1649_v41 }
 0xb0b   : > { %v1651_v44 = vadd.f32 1e-06, %v1650_v42 }
 0xb0d   : > { %4883 = vrsqrt.f32 %v1651_v44 }
 0xb1a   : > { %v4884_v45 = vpop.eup %4883 }
 0xb1b   : > { %v1653_v47 = vmul.f32 %v4884_v45, %v5426_v11  ;;  %v4754_v45 = vld [vmem:[#allocation2 + $0x214] ss:$20 sps:$4 sm:$0xff]  }
 0xb1d   : > { %v1660_v48 = vmul.f32 %v4022_v46, %v1653_v47  ;;  %v4752_v46 = vld [vmem:[#allocation2 + $0x210] ss:$20 sps:$4 sm:$0xff]  }
 0xb1e   : > { %v4757_v47 = vld [vmem:[#allocation2 + $0x1e4] ss:$20 sps:$4 sm:$0xff]  }
 0xb1f   : > { %v1661_v49 = vpack.c.bf16 %v1660_v48, %v1660_v48  ;;  %v4755_v48 = vld [vmem:[#allocation2 + $0x1e0] ss:$20 sps:$4 sm:$0xff]  }
 0xb21   : > { %1887 = vmatmul.mubr.bf16.vlgmr.msra.gmra.mxu0 %v1661_v49  ;;  %1928 = vmatmul.mubr.bf16.vlgmr.msra.gmra.mxu1 %v1661_v49  ;;  %v4760_v49 = vld [vmem:[#allocation2 + $0x1ec] ss:$20 sps:$4 sm:$0xff]  }
 0xb22   : > { %2429 = vmatprep.mubr.bf16.mxu1 %v5086_v29  ;;  %4245 = vmatpush3.bf16.msra.mxu0 %v4722_v51  ;;  %v4763_v51 = vld [vmem:[#allocation2 + $0x1bc] ss:$20 sps:$4 sm:$0xff]  }
 0xb23   : > { %4246 = vmatprep.subr.bf16.mxu0 %v4723_v52  ;;  %2398 = vmatpush1.bf16.msra.mxu1 %v4737_v27  ;;  %v4761_v52 = vld [vmem:[#allocation2 + $0x1b8] ss:$20 sps:$4 sm:$0xff]  }
 0xb24   : > { %2399 = vmatprep.subr.bf16.mxu1 %v4745_v9 }
 0xb26   : > { %4247 = vmatpush3.bf16.msra.mxu0 %v4724_v53  ;;  %v4764_v53 = vld [vmem:[#allocation2 + $0x1c0] ss:$20 sps:$4 sm:$0xff]  }
 0xb27   : > { %4248 = vmatprep.subr.bf16.mxu0 %v4725_v54  ;;  %2400 = vmatpush1.bf16.msra.mxu1 %v4743_v32  ;;  %v4769_v54 = vld [vmem:[#allocation2 + $0x194] ss:$20 sps:$4 sm:$0xff]  }
 0xb28   : > { %2401 = vmatprep.subr.bf16.mxu1 %v4751_v34 }
 0xb2a   : > { %4249 = vmatpush3.bf16.msra.mxu0 %v4726_v55  ;;  %v4772_v55 = vld [vmem:[#allocation2 + $0x19c] ss:$20 sps:$4 sm:$0xff]  }
 0xb2b   : > { %4250 = vmatprep.subr.bf16.mxu0 %v4727_v56  ;;  %2402 = vmatpush1.bf16.msra.mxu1 %v4749_v36  ;;  %v4767_v56 = vld [vmem:[#allocation2 + $0x190] ss:$20 sps:$4 sm:$0xff]  }
 0xb2c   : > { %2403 = vmatprep.subr.bf16.mxu1 %v4757_v47 }
 0xb2e   : > { %4251 = vmatpush3.bf16.msra.mxu0 %v4728_v57  ;;  %v4770_v57 = vld [vmem:[#allocation2 + $0x198] ss:$20 sps:$4 sm:$0xff]  }
 0xb2f   : > { %4252 = vmatprep.subr.bf16.mxu0 %v4729_v58  ;;  %2404 = vmatpush1.bf16.msra.mxu1 %v4755_v48  ;;  %v4775_v58 = vld [vmem:[#allocation2 + $0x16c] ss:$20 sps:$4 sm:$0xff]  }
 0xb30   : > { %2405 = vmatprep.subr.bf16.mxu1 %v4763_v51 }
 0xb32   : > { %4253 = vmatpush3.bf16.msra.mxu0 %v4730_v59  ;;  %v4778_v59 = vld [vmem:[#allocation2 + $0x174] ss:$20 sps:$4 sm:$0xff]  }
 0xb33   : > { %4254 = vmatprep.subr.bf16.mxu0 %v4731_v60  ;;  %2406 = vmatpush1.bf16.msra.mxu1 %v4761_v52  ;;  %v4773_v60 = vld [vmem:[#allocation2 + $0x168] ss:$20 sps:$4 sm:$0xff]  }
 0xb34   : > { %2407 = vmatprep.subr.bf16.mxu1 %v4769_v54 }
 0xb36   : > { %4255 = vmatpush3.bf16.msra.mxu0 %v4732_v61  ;;  %v4776_v61 = vld [vmem:[#allocation2 + $0x170] ss:$20 sps:$4 sm:$0xff]  }
 0xb37   : > { %4256 = vmatprep.subr.bf16.mxu0 %v4733_v62  ;;  %2408 = vmatpush1.bf16.msra.mxu1 %v4767_v56  ;;  %v4781_v62 = vld [vmem:[#allocation2 + $0x144] ss:$20 sps:$4 sm:$0xff]  }
 0xb38   : > { %2409 = vmatprep.subr.bf16.mxu1 %v4775_v58 }
 0xb3a   : > { %4257 = vmatpush3.bf16.msra.mxu0 %v4734_v63  ;;  %v4784_v63 = vld [vmem:[#allocation2 + $0x14c] ss:$20 sps:$4 sm:$0xff]  }
 0xb3b   : > { %4258 = vmatprep.subr.bf16.mxu0 %v4735_v0  ;;  %2410 = vmatpush1.bf16.msra.mxu1 %v4773_v60  ;;  %v4779_v0 = vld [vmem:[#allocation2 + $0x140] ss:$20 sps:$4 sm:$0xff]  }
 0xb3c   : > { %2411 = vmatprep.subr.bf16.mxu1 %v4781_v62 }
 0xb3e   : > { %4259 = vmatpush3.bf16.msra.mxu0 %v4736_v1  ;;  %v4782_v1 = vld [vmem:[#allocation2 + $0x148] ss:$20 sps:$4 sm:$0xff]  }
 0xb3f   : > { %2438 = vmatprep.subr.bf16.mxu0 %v4742_v4  ;;  %2412 = vmatpush1.bf16.msra.mxu1 %v4779_v0 }
 0xb40   : > { %4425 = vmatprep.subr.bf16.mxu1 %v5087_v35 }
 0xbe1   : > { %v1888_v2 = vpop.f32.mrf.mxu0  ;;  %v1929_v43 = vpop.f32.mrf.mxu1 }
 0xbe2   : > { %v4055_v3 = vmul.f32 -1.442695, %v1888_v2 }
 0xbe3   : > { %v1890_v5 = vpop.f32.mrf.mxu0  ;;  %v1931_v6 = vpop.f32.mrf.mxu1 }
 0xbe4   : > { %4885 = vpow2.f32 %v4055_v3  ;;  %v4056_v7 = vmul.f32 -1.442695, %v1890_v5 }
 0xbe5   : > { %v1892_v8 = vpop.f32.mrf.mxu0  ;;  %v1933_v10 = vpop.f32.mrf.mxu1 }
 0xbe6   : > { %4887 = vpow2.f32 %v4056_v7  ;;  %v4785_v10 = vld [vmem:[#allocation2 + $0x268] ss:$20 sps:$4 sm:$0xff]  }
 0xbe7   : > { %v1893_v12 = vpop.f32.mrf.mxu0  ;;  %v1934_v13 = vpop.f32.mrf.mxu1 }
 0xbe8   : > { %v4786_v13 = vld [vmem:[#allocation2 + $0x240] ss:$20 sps:$4 sm:$0xff]  }
 0xbf1   : > { %v4886_v14 = vpop.eup %4885 }
 0xbf2   : > { %v1942_v15 = vadd.f32 1.0, %v4886_v14  ;;  %v4787_v14 = vld [vmem:[#allocation2 + $0x218] ss:$20 sps:$4 sm:$0xff]  }
 0xbf3   : > { %v4888_v16 = vpop.eup %4887 }
 0xbf4   : > { %4889 = vrcp.f32 %v1942_v15  ;;  %v1943_v17 = vadd.f32 1.0, %v4888_v16  ;;  %v4788_v15 = vld [vmem:[#allocation2 + $0x1f0] ss:$20 sps:$4 sm:$0xff]   ;;  %v4789_v16 = vld [vmem:[#allocation2 + $0x1c8] ss:$20 sps:$4 sm:$0xff]  }
 0xbf6   : > { %4891 = vrcp.f32 %v1943_v17  ;;  %v4790_v17 = vld [vmem:[#allocation2 + $0x1a0] ss:$20 sps:$4 sm:$0xff]  }
 0xc01   : > { %v4890_v19 = vpop.eup %4889 }
 0xc02   : > { %v1948_v20 = vmul.f32 %v4890_v19, %v1888_v2  ;;  %v4791_v19 = vld [vmem:[#allocation2 + $0x178] ss:$20 sps:$4 sm:$0xff]  }
 0xc03   : > { %v4892_v21 = vpop.eup %4891 }
 0xc04   : > { %v1949_v22 = vmul.f32 %v4892_v21, %v1890_v5  ;;  %v1950_v23 = vmul.f32 %v1948_v20, %v1929_v43  ;;  %v4792_v20 = vld [vmem:[#allocation2 + $0x150] ss:$20 sps:$4 sm:$0xff]  }
 0xc06   : > { %v1951_v24 = vmul.f32 %v1949_v22, %v1931_v6  ;;  %v1952_v26 = vpack.c.bf16 %v1950_v23, %v1950_v23  ;;  %v4074_v6 = vld [vmem:[%s5621_s4 + $0x1] ss:$0 sm:$0xff] }
 0xc08   : > { %v1953_v25 = vpack.c.bf16 %v1951_v24, %v1951_v24 }
 0xc0a   : > { %2114 = vmatprep.mubr.bf16.mxu0 %v1953_v25  ;;  %v4926_v25 = vld [vmem:[%s5619_s2] sm:$0xff] }
 0xc0b   : > { %2115 = vmatmul.mubr.bf16.vlgmr.msra.gmra.mxu0 %v1952_v26 }
 0xc0c   : > { %2470 = vmatprep.mubr.bf16.mxu0 %v5086_v29  ;;  %2439 = vmatpush1.bf16.msra.mxu0 %v4740_v30 }
 0xc0d   : > { %2440 = vmatprep.subr.bf16.mxu0 %v4748_v31 }
 0xc10   : > { %2441 = vmatpush1.bf16.msra.mxu0 %v4746_v33 }
 0xc11   : > { %2442 = vmatprep.subr.bf16.mxu0 %v4754_v45 }
 0xc14   : > { %2443 = vmatpush1.bf16.msra.mxu0 %v4752_v46 }
 0xc15   : > { %2444 = vmatprep.subr.bf16.mxu0 %v4760_v49 }
 0xc18   : > { %2445 = vmatpush1.bf16.msra.mxu0 %v4758_v50 }
 0xccb   : > { %v4260_v37 = vpop.f32.mrf.mxu0 }
 0xccd   : > { %v4261_v38 = vpop.f32.mrf.mxu0 }
 0xcce   : > { %v4262_v39 = vadd.f32 %v4261_v38, %v4260_v37 }
 0xccf   : > { %v4263_v40 = vpop.f32.mrf.mxu0 }
 0xcd0   : > { %v5437_v41 = vadd.f32 %v4262_v39, %v5426_v11  ;;  %v4766_v11 = vld [vmem:[#allocation2 + $0x1c4] ss:$20 sps:$4 sm:$0xff]  }
 0xcd1   : > { %v4264_v42 = vpop.f32.mrf.mxu0  ;;  %2446 = vmatprep.subr.bf16.mxu0 %v4766_v11 }
 0xcd2   : > { %v2125_v44 = vmul.f32 %v5437_v41, %v5437_v41  ;;  %2447 = vmatpush1.bf16.msra.mxu0 %v4764_v53 }
 0xcd3   : > { %2448 = vmatprep.subr.bf16.mxu0 %v4772_v55 }
 0xcd4   : > { %2126 = vadd.xlane.f32.xlu1 %v2125_v44 }
 0xcd6   : > { %2449 = vmatpush1.bf16.msra.mxu0 %v4770_v57 }
 0xcd7   : > { %2450 = vmatprep.subr.bf16.mxu0 %v4778_v59 }
 0xcda   : > { %2451 = vmatpush1.bf16.msra.mxu0 %v4776_v61 }
 0xcdb   : > { %2452 = vmatprep.subr.bf16.mxu0 %v4784_v63 }
 0xcde   : > { %2453 = vmatpush1.bf16.msra.mxu0 %v4782_v1 }
 0xcdf   : > { %4445 = vmatprep.subr.bf16.mxu0 %v5087_v35 }
 0xd5d   : > { %v2127_v2 = vpop.xlane.xlu1 %2126 }
 0xd5e   : > { %v2128_v43 = vmul.f32 0.0078125, %v2127_v2 }
 0xd60   : > { %v2129_v3 = vadd.f32 1e-06, %v2128_v43 }
 0xd62   : > { %4893 = vrsqrt.f32 %v2129_v3 }
 0xd6f   : > { %v4894_v5 = vpop.eup %4893 }
 0xd70   : > { %v2131_v7 = vmul.f32 %v4894_v5, %v5437_v41 }
 0xd72   : > { %v2138_v8 = vmul.f32 %v4074_v6, %v2131_v7 }
 0xd74   : > { %v2139_v12 = vpack.c.bf16 %v2138_v8, %v2138_v8 }
 0xd76   : > { %2430 = vmatmul.mubr.bf16.vlgmr.msra.gmra.mxu1 %v2139_v12  ;;  %2471 = vmatmul.mubr.bf16.vlgmr.msra.gmra.mxu0 %v2139_v12 }
 0xd77   : > { %4426 = vmatpush3.bf16.msra.mxu1 %v4785_v10  ;;  %4441 = vmatprep.mubr.msk.bf16.mxu1 %vm5088_vm0, %v5087_v35  ;;  %v4793_v10 = vld [vmem:[%s5625_s8 + $0x48] sm:$0xff]  }
 0xd78   : > { %4427 = vmatprep.subr.bf16.mxu1 %v5087_v35  ;;  %4447 = vmatprep.mubr.msk.bf16.mxu0 %vm5088_vm0, %v5087_v35 }
 0xd7b   : > { %4428 = vmatpush3.bf16.msra.mxu1 %v4786_v13 }
 0xd7c   : > { %4429 = vmatprep.subr.bf16.mxu1 %v5087_v35 }
 0xd7f   : > { %4430 = vmatpush3.bf16.msra.mxu1 %v4787_v14 }
 0xd80   : > { %4431 = vmatprep.subr.bf16.mxu1 %v5087_v35 }
 0xd83   : > { %4432 = vmatpush3.bf16.msra.mxu1 %v4788_v15 }
 0xd84   : > { %4433 = vmatprep.subr.bf16.mxu1 %v5087_v35 }
 0xd87   : > { %4434 = vmatpush3.bf16.msra.mxu1 %v4789_v16 }
 0xd88   : > { %4435 = vmatprep.subr.bf16.mxu1 %v5087_v35 }
 0xd8b   : > { %4436 = vmatpush3.bf16.msra.mxu1 %v4790_v17 }
 0xd8c   : > { %4437 = vmatprep.subr.bf16.mxu1 %v5087_v35 }
 0xd8f   : > { %4438 = vmatpush3.bf16.msra.mxu1 %v4791_v19 }
 0xd90   : > { %4439 = vmatprep.subr.bf16.mxu1 %v5087_v35 }
 0xd93   : > { %4440 = vmatpush3.bf16.msra.mxu1 %v4792_v20 }
 0xd94   : > { %4451 = vmatprep.subr.bf16.mxu1 %v5087_v35 }
 0xd96   : > { %4442 = vmatmul.mubr.bf16.vlgmr.msra.gmra.mxu1 %v2139_v12  ;;  %v4794_v12 = vld [vmem:[%s5625_s8 + $0x40] sm:$0xff]  }
 0xd97   : > { %4453 = vmatprep.mubr.msk.bf16.mxu1 %vm5088_vm0, %v5087_v35 }
 0xe36   : > { %v2431_v21 = vpop.f32.mrf.mxu1  ;;  %v2472_v22 = vpop.f32.mrf.mxu0 }
 0xe37   : > { %v2519_v26 = vmul.f32 %v4926_v25, %v2431_v21  ;;  %v2522_v27 = vmul.f32 %v4926_v25, %v2472_v22 }
 0xe38   : > { %v2433_v23 = vpop.f32.mrf.mxu1  ;;  %v2474_v24 = vpop.f32.mrf.mxu0 }
 0xe39   : > { %v2520_v30 = vmul.f32 %v4927_v28, %v2433_v23  ;;  %v2523_v4 = vmul.f32 %v4927_v28, %v2474_v24 }
 0xe3a   : > { %v2435_v9 = vpop.f32.mrf.mxu1  ;;  %v2476_v31 = vpop.f32.mrf.mxu0 }
 0xe3b   : > { %v2521_v32 = vadd.f32 %v2520_v30, %v2519_v26  ;;  %v2524_v33 = vadd.f32 %v2523_v4, %v2522_v27 }
 0xe3c   : > { %v2436_v34 = vpop.f32.mrf.mxu1  ;;  %v2477_v36 = vpop.f32.mrf.mxu0 }
 0xe3d   : > { %v2542_v37 = vpack.c.bf16 %v2521_v32, %v2521_v32  ;;  %v2543_v38 = vpack.c.bf16 %v2524_v33, %v2524_v33 }
 0xe3f   : > { %2733 = vrot.lane.b32.xlu1 %v2543_v38, %s5091_s15  ;;  %2736 = vrot.lane.b32.xlu0 %v2542_v37, %s5091_s15  ;;  %v2549_v39 = vsel %vm869_vm1, %v2542_v37, 0 }
 0xe40   : > { %4446 = vmatpush3.bf16.xpose.msra.mxu0 %v2549_v39 }
 0xe41   : > { %4457 = vmatprep.subr.bf16.mxu0 %v5087_v35 }
 0xe47   : > { %4448 = vmatmul.mubr.msk.bf16.vlgmr.msra.gmra.mxu0 %vm869_vm1, %v2543_v38 }
 0xe48   : > { %4461 = vmatprep.mubr.msk.bf16.mxu0 %vm5088_vm0, %v5087_v35  ;;  %4458 = vmatpush3.bf16.msra.mxu0 %v4793_v10 }
 0xe49   : > { %4459 = vmatprep.subr.bf16.mxu0 %v5087_v35 }
 0xe4c   : > { %4460 = vmatpush3.bf16.msra.mxu0 %v4794_v12 }
 0xe4d   : > { %4471 = vmatprep.subr.bf16.mxu0 %v5087_v35 }
 0xe56   : > { %v2513_v40 = vpop.f32.mrf.mxu1 }
 0xe57   : > { %v2544_v42 = vpack.c.bf16 %v2513_v40, %v2513_v40 }
 0xe58   : > { %v4443_v44 = vpop.f32.mrf.mxu1 }
 0xe59   : > { %2823 = vrot.lane.b32.xlu0 %v2544_v42, %s5091_s15  ;;  %v2633_v45 = vsel %vm963_vm2, %v2544_v42, 0 }
 0xe5a   : > { %v2516_v46 = vpop.f32.mrf.mxu1  ;;  %4452 = vmatpush3.bf16.msra.mxu1 %v2633_v45 }
 0xe5b   : > { %4465 = vmatprep.subr.bf16.mxu1 %v5087_v35 }
 0xe5c   : > { %v4444_v47 = vpop.f32.mrf.mxu1 }
 0xe5d   : > { %2930 = vrot.lane.b32.xlu0 %v2542_v37, %s5089_s29 }
 0xe61   : > { %2928 = vrot.lane.b32.xlu0 %v2543_v38, %s5089_s29 }
 0xeb1   : > { %v2734_v13 = vpop.permute.xlu1 %2733  ;;  %v2737_v14 = vpop.permute.xlu0 %2736 }
 0xeb2   : > { %v2742_v16 = vsel %vm869_vm1, %v2737_v14, 0 }
 0xecb   : > { %v2824_v17 = vpop.permute.xlu0 %2823 }
 0xecc   : > { %v2829_v22 = vsel %vm963_vm2, %v2824_v17, 0 }
 0xf07   : > { %v2585_v48 = vpop.f32.mrf.mxu0 }
 0xf08   : > { %v2591_v49 = vmul.f32 0.17677669, %v2585_v48 }
 0xf09   : > { %v4449_v50 = vpop.f32.mrf.mxu0 }
 0xf0a   : > { %v2592_v51 = vadd.f32 %v2591_v49, %v5323_v18 }
 0xf0b   : > { %v2588_v52 = vpop.f32.mrf.mxu0 }
 0xf0c   : > { %v2593_v11 = vsel %vm923_vm3, %v2592_v51, -inf }
 0xf0d   : > { %v2594_v53 = vrot.slane %v2593_v11, 4  ;;  %v4450_v54 = vpop.f32.mrf.mxu0 }
 0xf0e   : > { %v2931_v54 = vpop.permute.xlu0 %2930 }
 0xf0f   : > { %v2595_v55 = vmax.f32 %v2593_v11, %v2594_v53  ;;  %v4795_v11 = vld [vmem:[%s5625_s8 + $0x58] sm:$0xff]   ;;  %v4796_v53 = vld [vmem:[%s5625_s8 + $0x50] sm:$0xff]  }
 0xf11   : > { %v2596_v56 = vrot.slane %v2595_v55, 2 }
 0xf13   : > { %v2597_v57 = vmax.f32 %v2595_v55, %v2596_v56  ;;  %v2929_v55 = vpop.permute.xlu0 %2928 }
 0xf15   : > { %v2598_v58 = vrot.slane %v2597_v57, 1 }
 0xf17   : > { %v2599_v59 = vmax.f32 %v2597_v57, %v2598_v58  ;;  %v2936_v57 = vsel %vm869_vm1, %v2931_v54, 0 }
 0xf19   : > { %v2600_v60 = vsub.f32 %v2592_v51, %v2599_v59 }
 0xf1b   : > { %v2601_v61 = vmul.f32 1.442695, %v2600_v60 }
 0xf1d   : > { %4895 = vpow2.f32 %v2601_v61 }
 0xf2a   : > { %v4896_v62 = vpop.eup %4895 }
 0xf2b   : > { %v2603_v63 = vsel %vm923_vm3, %v4896_v62, 0.0 }
 0xf2c   : > { %v2604_v0 = vrot.slane %v2603_v63, 4 }
 0xf2e   : > { %v2605_v1 = vadd.f32 %v2604_v0, %v2603_v63 }
 0xf30   : > { %v2606_v2 = vrot.slane %v2605_v1, 2 }
 0xf32   : > { %v2607_v43 = vadd.f32 %v2606_v2, %v2605_v1 }
 0xf34   : > { %v2608_v3 = vrot.slane %v2607_v43, 1 }
 0xf36   : > { %v2609_v5 = vadd.f32 %v2608_v3, %v2607_v43 }
 0xf38   : > { %4897 = vrcp.f32 %v2609_v5 }
 0xf45   : > { %v4898_v6 = vpop.eup %4897 }
 0xf46   : > { %v2611_v7 = vmul.f32 %v4898_v6, %v4896_v62 }
 0xf48   : > { %v2612_v8 = vpack.c.bf16 %v2611_v7, %v2611_v7 }
 0xf4a   : > { %2613 = vxpose.xlu1.c.b16.start.end [1/1] (short) (narrow) %v2612_v8, 16 }
 0xf4e   : > { %3016 = vrot.lane.b32.xlu1 %v2544_v42, %s5089_s29  ;;  %s5092_s29 = smov [#allocation8]  }
 0xf4f   : > { %4608 = vset.pattern.permute.xlu1 %v5086_v29 }
 0xf52   : > { %3123 = vrot.lane.b32.xlu1 %v2542_v37, %s5090_s13 }
 0xf56   : > { %3121 = vrot.lane.b32.xlu1 %v2543_v38, %s5090_s13 }
 0xf5a   : > { %3209 = vrot.lane.b32.xlu1 %v2544_v42, %s5090_s13  ;;  %s5011_s13 = sshll.u32 %s5092_s29, 4  ;;  %s5012_s13 = int_to_ptr.vmem [resolvable:$false] %s5011_s13 }
 0xf5b   : > { %s5013_s21 = scalar_lea.vmem %s5012_s13, 32  ;;  %p5014_p6 = scmp.lt.s32.totalorder %s3852_s30, %s5012_s13 }
 0xf5c   : > { %p5015_p9 = scmp.lt.s32.totalorder %s5013_s21, %s5007_s14 }
 0xf5e   : > { %p5016_p8 = por %p5015_p9, %p5014_p6 }
 0xf60   : > { %p5017_p11 = pnand %p5016_p8, %p5010_p7 }
 0xfac   : > { %v2621_v15 = vpop.trf.xlu1 }
 0xfad   : > { %4454 = vmatmul.mubr.msk.bf16.vlgmr.msra.gmra.mxu1 %vm923_vm3, %v2621_v15 }
 0xfae   : > { %4466 = vmatpush3.bf16.xpose.msra.mxu1 %v2742_v16  ;;  %4467 = vmatprep.mubr.msk.bf16.mxu1 %vm5088_vm0, %v5087_v35 }
 0xfaf   : > { %4477 = vmatprep.subr.bf16.mxu1 %v5087_v35 }
 0xfb5   : > { %4468 = vmatmul.mubr.msk.bf16.vlgmr.msra.gmra.mxu1 %vm869_vm1, %v2734_v13 }
 0xfb6   : > { %4481 = vmatprep.mubr.msk.bf16.mxu1 %vm5088_vm0, %v5087_v35  ;;  %4478 = vmatpush3.bf16.msra.mxu1 %v4795_v11 }
 0xfb7   : > { %4479 = vmatprep.subr.bf16.mxu1 %v5087_v35 }
 0xfba   : > { %4480 = vmatpush3.bf16.msra.mxu1 %v4796_v53 }
 0xfbb   : > { %4491 = vmatprep.subr.bf16.mxu1 %v5087_v35 }
 0xfc0   : > { %v3017_v62 = vpop.permute.xlu1 %3016 }
 0xfc1   : > { %v3022_v2 = vsel %vm963_vm2, %v3017_v62, 0 }
0x106d   : > { %v2669_v19 = vpop.f32.mrf.mxu1 }
0x106e   : > { %v2675_v20 = vpack.c.bf16 %v2669_v19, %v2669_v19 }
0x106f   : > { %v4455_v21 = vpop.f32.mrf.mxu1 }
0x1070   : > { %4462 = vmatmul.mubr.msk.bf16.vlgmr.msra.gmra.mxu0 %vm869_vm1, %v2675_v20 }
0x1071   : > { %4472 = vmatpush3.bf16.msra.mxu0 %v2829_v22  ;;  %v2672_v23 = vpop.f32.mrf.mxu1  ;;  %4473 = vmatprep.mubr.msk.bf16.mxu0 %vm5088_vm0, %v5087_v35 }
0x1072   : > { %4485 = vmatprep.subr.bf16.mxu0 %v5087_v35 }
0x1073   : > { %v4456_v24 = vpop.f32.mrf.mxu1 }
0x1075   : > { %v2778_v25 = vpop.f32.mrf.mxu1 }
0x1076   : > { %v2784_v26 = vmul.f32 0.17677669, %v2778_v25 }
0x1077   : > { %v4469_v27 = vpop.f32.mrf.mxu1 }
0x1078   : > { %v2785_v28 = vadd.f32 %v2784_v26, %v5323_v18 }
0x1079   : > { %v2781_v30 = vpop.f32.mrf.mxu1 }
0x107a   : > { %v2786_v4 = vsel %vm923_vm3, %v2785_v28, -inf }
0x107b   : > { %v2787_v9 = vrot.slane %v2786_v4, 4  ;;  %v4470_v31 = vpop.f32.mrf.mxu1 }
0x107d   : > { %v2788_v32 = vmax.f32 %v2786_v4, %v2787_v9 }
0x107f   : > { %v2789_v33 = vrot.slane %v2788_v32, 2 }
0x1081   : > { %v2790_v34 = vmax.f32 %v2788_v32, %v2789_v33  ;;  %v4797_v33 = vld [vmem:[%s5625_s8 + $0x68] sm:$0xff]  }
0x1083   : > { %v2791_v36 = vrot.slane %v2790_v34, 1 }
0x1085   : > { %v2792_v37 = vmax.f32 %v2790_v34, %v2791_v36  ;;  %v4798_v34 = vld [vmem:[%s5625_s8 + $0x60] sm:$0xff]   ;;  %v3124_v36 = vpop.permute.xlu1 %3123 }
0x1087   : > { %v2793_v38 = vsub.f32 %v2785_v28, %v2792_v37 }
0x1089   : > { %v2794_v39 = vmul.f32 1.442695, %v2793_v38  ;;  %v3129_v38 = vsel %vm869_vm1, %v3124_v36, 0  ;;  %v4810_v36 = vld [vmem:[#allocation5 + $0x1c8] ss:$16 sps:$4 sm:$0xff]  }
0x108b   : > { %4899 = vpow2.f32 %v2794_v39  ;;  %v3122_v39 = vpop.permute.xlu1 %3121 }
0x1098   : > { %v4900_v40 = vpop.eup %4899 }
0x1099   : > { %v2796_v42 = vsel %vm923_vm3, %v4900_v40, 0.0 }
0x109a   : > { %v2797_v44 = vrot.slane %v2796_v42, 4 }
0x109c   : > { %v2798_v45 = vadd.f32 %v2797_v44, %v2796_v42 }
0x109e   : > { %v2799_v46 = vrot.slane %v2798_v45, 2 }
0x10a0   : > { %v2800_v47 = vadd.f32 %v2799_v46, %v2798_v45 }
0x10a2   : > { %v2801_v48 = vrot.slane %v2800_v47, 1 }
0x10a4   : > { %v2802_v49 = vadd.f32 %v2801_v48, %v2800_v47  ;;  %v3210_v48 = vpop.permute.xlu1 %3209 }
0x10a6   : > { %4901 = vrcp.f32 %v2802_v49 }
0x10b3   : > { %v4902_v50 = vpop.eup %4901 }
0x10b4   : > { %v2804_v51 = vmul.f32 %v4902_v50, %v4900_v40 }
0x10b6   : > { %v2805_v52 = vpack.c.bf16 %v2804_v51, %v2804_v51 }
0x10b8   : > { %2806 = vxpose.xlu0.c.b16.start.end [1/1] (short) (narrow) %v2805_v52, 16  ;;  %v3215_v52 = vsel %vm963_vm2, %v3210_v48, 0  ;;  %v4821_v48 = vld [vmem:[#allocation5 + $0x184] ss:$16 sps:$4 sm:$0xff]  }
0x111a   : > { %v2814_v56 = vpop.trf.xlu0 }
0x111b   : > { %4474 = vmatmul.mubr.msk.bf16.vlgmr.msra.gmra.mxu0 %vm923_vm3, %v2814_v56 }
0x111c   : > { %4486 = vmatpush3.bf16.xpose.msra.mxu0 %v2936_v57  ;;  %4487 = vmatprep.mubr.msk.bf16.mxu0 %vm5088_vm0, %v5087_v35 }
0x111d   : > { %4497 = vmatprep.subr.bf16.mxu0 %v5087_v35 }
0x1123   : > { %4488 = vmatmul.mubr.msk.bf16.vlgmr.msra.gmra.mxu0 %vm869_vm1, %v2929_v55 }
0x1124   : > { %4501 = vmatprep.mubr.msk.bf16.mxu0 %vm5088_vm0, %v5087_v35  ;;  %4498 = vmatpush3.bf16.msra.mxu0 %v4797_v33  ;;  %v4812_v33 = vld [vmem:[#allocation5 + $0x1cc] ss:$16 sps:$4 sm:$0xff]  }
0x1125   : > { %4499 = vmatprep.subr.bf16.mxu0 %v5087_v35 }
0x1128   : > { %4500 = vmatpush3.bf16.msra.mxu0 %v4798_v34  ;;  %v4807_v34 = vld [vmem:[#allocation5 + $0x1c0] ss:$16 sps:$4 sm:$0xff]  }
0x1129   : > { %4511 = vmatprep.subr.bf16.mxu0 %v5087_v35 }
0x1130   : > { %v2725_v58 = vpop.f32.mrf.mxu0 }
0x1131   : > { %v2731_v40 = vadd.f32 %v2725_v58, %v5437_v41 }
0x1132   : > { %v4463_v59 = vpop.f32.mrf.mxu0 }
0x1134   : > { %v2728_v60 = vpop.f32.mrf.mxu0 }
0x1136   : > { %v4464_v61 = vpop.f32.mrf.mxu0 }
0x11db   : > { %v2865_v63 = vpop.f32.mrf.mxu0 }
0x11dc   : > { %v2871_v0 = vpack.c.bf16 %v2865_v63, %v2865_v63 }
0x11dd   : > { %v4475_v1 = vpop.f32.mrf.mxu0 }
0x11de   : > { %4482 = vmatmul.mubr.msk.bf16.vlgmr.msra.gmra.mxu1 %vm869_vm1, %v2871_v0 }
0x11df   : > { %4492 = vmatpush3.bf16.msra.mxu1 %v3022_v2  ;;  %v2868_v43 = vpop.f32.mrf.mxu0  ;;  %4493 = vmatprep.mubr.msk.bf16.mxu1 %vm5088_vm0, %v5087_v35 }
0x11e0   : > { %4505 = vmatprep.subr.bf16.mxu1 %v5087_v35 }
0x11e1   : > { %v4476_v3 = vpop.f32.mrf.mxu0 }
0x11e3   : > { %v2972_v5 = vpop.f32.mrf.mxu0 }
0x11e4   : > { %v2978_v6 = vmul.f32 0.17677669, %v2972_v5 }
0x11e5   : > { %v4489_v7 = vpop.f32.mrf.mxu0 }
0x11e6   : > { %v2979_v8 = vadd.f32 %v2978_v6, %v5323_v18 }
0x11e7   : > { %v2975_v10 = vpop.f32.mrf.mxu0 }
0x11e8   : > { %v2980_v12 = vsel %vm923_vm3, %v2979_v8, -inf }
0x11e9   : > { %v2981_v13 = vrot.slane %v2980_v12, 4  ;;  %v4490_v14 = vpop.f32.mrf.mxu0 }
0x11eb   : > { %v2982_v15 = vmax.f32 %v2980_v12, %v2981_v13 }
0x11ed   : > { %v2983_v16 = vrot.slane %v2982_v15, 2 }
0x11ef   : > { %v2984_v17 = vmax.f32 %v2982_v15, %v2983_v16  ;;  %v4799_v16 = vld [vmem:[%s5625_s8 + $0x78] sm:$0xff]  }
0x11f1   : > { %v2985_v19 = vrot.slane %v2984_v17, 1 }
0x11f3   : > { %v2986_v20 = vmax.f32 %v2984_v17, %v2985_v19 }
0x11f5   : > { %v2987_v21 = vsub.f32 %v2979_v8, %v2986_v20 }
0x11f7   : > { %v2988_v22 = vmul.f32 1.442695, %v2987_v21 }
0x11f9   : > { %4903 = vpow2.f32 %v2988_v22 }
0x1206   : > { %v4904_v23 = vpop.eup %4903 }
0x1207   : > { %v2990_v24 = vsel %vm923_vm3, %v4904_v23, 0.0 }
0x1208   : > { %v2991_v25 = vrot.slane %v2990_v24, 4 }
0x120a   : > { %v2992_v26 = vadd.f32 %v2991_v25, %v2990_v24  ;;  %v4800_v24 = vld [vmem:[%s5625_s8 + $0x70] sm:$0xff]  }
0x120c   : > { %v2993_v27 = vrot.slane %v2992_v26, 2 }
0x120e   : > { %v2994_v28 = vadd.f32 %v2993_v27, %v2992_v26 }
0x1210   : > { %v2995_v30 = vrot.slane %v2994_v28, 1 }
0x1212   : > { %v2996_v4 = vadd.f32 %v2995_v30, %v2994_v28  ;;  %v4801_v30 = vld [vmem:[#allocation5 + $0x1e0] ss:$16 sps:$4 sm:$0xff]  }
0x1214   : > { %4905 = vrcp.f32 %v2996_v4  ;;  %v4803_v4 = vld [vmem:[#allocation5 + $0x1e4] ss:$16 sps:$4 sm:$0xff]  }
0x1221   : > { %v4906_v9 = vpop.eup %4905 }
0x1222   : > { %v2998_v31 = vmul.f32 %v4906_v9, %v4904_v23  ;;  %v4804_v9 = vld [vmem:[#allocation5 + $0x1e8] ss:$16 sps:$4 sm:$0xff]  }
0x1224   : > { %v2999_v32 = vpack.c.bf16 %v2998_v31, %v2998_v31  ;;  %v4806_v31 = vld [vmem:[#allocation5 + $0x1ec] ss:$16 sps:$4 sm:$0xff]  }
0x1226   : > { %3000 = vxpose.xlu0.c.b16.start.end [1/1] (short) (narrow) %v2999_v32, 16  ;;  %v4809_v32 = vld [vmem:[#allocation5 + $0x1c4] ss:$16 sps:$4 sm:$0xff]  }
0x1288   : > { %v3008_v37 = vpop.trf.xlu0 }
0x1289   : > { %4494 = vmatmul.mubr.msk.bf16.vlgmr.msra.gmra.mxu1 %vm923_vm3, %v3008_v37 }
0x128a   : > { %4506 = vmatpush3.bf16.xpose.msra.mxu1 %v3129_v38  ;;  %4507 = vmatprep.mubr.msk.bf16.mxu1 %vm5088_vm0, %v5087_v35 }
0x128b   : > { %4517 = vmatprep.subr.bf16.mxu1 %v5087_v35 }
0x1291   : > { %4508 = vmatmul.mubr.msk.bf16.vlgmr.msra.gmra.mxu1 %vm869_vm1, %v3122_v39 }
0x1292   : > { %4521 = vmatprep.mubr.msk.bf16.mxu1 %vm5088_vm0, %v5087_v35  ;;  %4518 = vmatpush3.bf16.msra.mxu1 %v4799_v16  ;;  %v4854_v16 = vld [vmem:[#allocation7 + $0xa8] sm:$0xff]  }
0x1293   : > { %4519 = vmatprep.subr.bf16.mxu1 %v5087_v35 }
0x1296   : > { %4520 = vmatpush3.bf16.msra.mxu1 %v4800_v24  ;;  %v4861_v24 = vld [vmem:[#allocation7 + $0xc8] sm:$0xff]  }
0x1297   : > { %3565 = vmatprep.subr.bf16.mxu1 %v4806_v31 }
0x129e   : > { %v2921_v42 = vpop.f32.mrf.mxu1 }
0x129f   : > { %v2927_v44 = vadd.f32 %v2921_v42, %v2731_v40 }
0x12a0   : > { %v4483_v45 = vpop.f32.mrf.mxu1 }
0x12a1   : > { %v4818_v45 = vld [vmem:[#allocation5 + $0x1ac] ss:$16 sps:$4 sm:$0xff]  }
0x12a2   : > { %v2924_v46 = vpop.f32.mrf.mxu1 }
0x12a3   : > { %v4813_v46 = vld [vmem:[#allocation5 + $0x1a0] ss:$16 sps:$4 sm:$0xff]  }
0x12a4   : > { %v4484_v47 = vpop.f32.mrf.mxu1 }
0x12a5   : > { %v4816_v47 = vld [vmem:[#allocation5 + $0x1a8] ss:$16 sps:$4 sm:$0xff]  }
0x1349   : > { %v3058_v49 = vpop.f32.mrf.mxu1 }
0x134a   : > { %v3064_v50 = vpack.c.bf16 %v3058_v49, %v3058_v49  ;;  %v4824_v49 = vld [vmem:[#allocation5 + $0x18c] ss:$16 sps:$4 sm:$0xff]  }
0x134b   : > { %v4495_v51 = vpop.f32.mrf.mxu1 }
0x134c   : > { %4502 = vmatmul.mubr.msk.bf16.vlgmr.msra.gmra.mxu0 %vm869_vm1, %v3064_v50  ;;  %v4819_v50 = vld [vmem:[#allocation5 + $0x180] ss:$16 sps:$4 sm:$0xff]   ;;  %v4822_v51 = vld [vmem:[#allocation5 + $0x188] ss:$16 sps:$4 sm:$0xff]  }
0x134d   : > { %4512 = vmatpush3.bf16.msra.mxu0 %v3215_v52  ;;  %v3061_v11 = vpop.f32.mrf.mxu1  ;;  %4513 = vmatprep.mubr.msk.bf16.mxu0 %vm5088_vm0, %v5087_v35  ;;  %v4827_v52 = vld [vmem:[#allocation5 + $0x164] ss:$16 sps:$4 sm:$0xff]  }
0x134e   : > { %3524 = vmatprep.subr.bf16.mxu0 %v4803_v4  ;;  %v4830_v11 = vld [vmem:[#allocation5 + $0x16c] ss:$16 sps:$4 sm:$0xff]  }
0x134f   : > { %v4496_v53 = vpop.f32.mrf.mxu1 }
0x1350   : > { %v4825_v53 = vld [vmem:[#allocation5 + $0x160] ss:$16 sps:$4 sm:$0xff]  }
0x1351   : > { %v3165_v41 = vpop.f32.mrf.mxu1 }
0x1352   : > { %v3171_v54 = vmul.f32 0.17677669, %v3165_v41  ;;  %v4828_v41 = vld [vmem:[#allocation5 + $0x168] ss:$16 sps:$4 sm:$0xff]  }
0x1353   : > { %v4509_v55 = vpop.f32.mrf.mxu1 }
0x1354   : > { %v3172_v56 = vadd.f32 %v3171_v54, %v5323_v18  ;;  %v4833_v54 = vld [vmem:[#allocation5 + $0x144] ss:$16 sps:$4 sm:$0xff]   ;;  %v4836_v55 = vld [vmem:[#allocation5 + $0x14c] ss:$16 sps:$4 sm:$0xff]  }
0x1355   : > { %v3168_v57 = vpop.f32.mrf.mxu1 }
0x1356   : > { %v3173_v58 = vsel %vm923_vm3, %v3172_v56, -inf  ;;  %v4834_v57 = vld [vmem:[#allocation5 + $0x148] ss:$16 sps:$4 sm:$0xff]  }
0x1357   : > { %v3174_v59 = vrot.slane %v3173_v58, 4  ;;  %v4510_v60 = vpop.f32.mrf.mxu1 }
0x1358   : > { %v4837_v60 = vld [vmem:[#allocation5 + $0x120] ss:$16 sps:$4 sm:$0xff]  }
0x1359   : > { %v3175_v61 = vmax.f32 %v3173_v58, %v3174_v59  ;;  %v4839_v58 = vld [vmem:[#allocation5 + $0x124] ss:$16 sps:$4 sm:$0xff]   ;;  %v4842_v59 = vld [vmem:[#allocation5 + $0x12c] ss:$16 sps:$4 sm:$0xff]  }
0x135b   : > { %v3176_v62 = vrot.slane %v3175_v61, 2 }
0x135d   : > { %v3177_v63 = vmax.f32 %v3175_v61, %v3176_v62  ;;  %v4840_v61 = vld [vmem:[#allocation5 + $0x128] ss:$16 sps:$4 sm:$0xff]   ;;  %v4845_v62 = vld [vmem:[#allocation5 + $0x104] ss:$16 sps:$4 sm:$0xff]  }
0x135f   : > { %v3178_v0 = vrot.slane %v3177_v63, 1 }
0x1361   : > { %v3179_v1 = vmax.f32 %v3177_v63, %v3178_v0  ;;  %v4848_v63 = vld [vmem:[#allocation5 + $0x10c] ss:$16 sps:$4 sm:$0xff]   ;;  %v4843_v0 = vld [vmem:[#allocation5 + $0x100] ss:$16 sps:$4 sm:$0xff]  }
0x1363   : > { %v3180_v2 = vsub.f32 %v3172_v56, %v3179_v1  ;;  %v4831_v56 = vld [vmem:[#allocation5 + $0x140] ss:$16 sps:$4 sm:$0xff]   ;;  %v4846_v1 = vld [vmem:[#allocation5 + $0x108] ss:$16 sps:$4 sm:$0xff]  }
0x1365   : > { %v3181_v43 = vmul.f32 1.442695, %v3180_v2 }
0x1367   : > { %4907 = vpow2.f32 %v3181_v43 }
0x1374   : > { %v4908_v3 = vpop.eup %4907 }
0x1375   : > { %v3183_v5 = vsel %vm923_vm3, %v4908_v3, 0.0 }
0x1376   : > { %v3184_v6 = vrot.slane %v3183_v5, 4 }
0x1378   : > { %v3185_v7 = vadd.f32 %v3184_v6, %v3183_v5  ;;  %v4152_v6 = vld [vmem:[%s5622_s5 + $0x1] ss:$0 sm:$0xff] }
0x137a   : > { %v3186_v8 = vrot.slane %v3185_v7, 2 }
0x137c   : > { %v3187_v18 = vadd.f32 %v3186_v8, %v3185_v7 }
0x137e   : > { %v3188_v10 = vrot.slane %v3187_v18, 1 }
0x1380   : > { %v3189_v12 = vadd.f32 %v3188_v10, %v3187_v18  ;;  %v4849_v10 = vld [vmem:[#allocation7 + $0xf8] sm:$0xff]  }
0x1382   : > { %4909 = vrcp.f32 %v3189_v12  ;;  %v4850_v12 = vld [vmem:[#allocation7 + $0xb8] sm:$0xff]  }
0x138f   : > { %v4910_v13 = vpop.eup %4909 }
0x1390   : > { %v3191_v14 = vmul.f32 %v4910_v13, %v4908_v3  ;;  %v4851_v13 = vld [vmem:[#allocation7 + $0xf0] sm:$0xff]  }
0x1392   : > { %v3192_v15 = vpack.c.bf16 %v3191_v14, %v3191_v14  ;;  %v4852_v14 = vld [vmem:[#allocation7 + $0xb0] sm:$0xff]  }
0x1394   : > { %3193 = vxpose.xlu0.c.b16.start.end [1/1] (short) (narrow) %v3192_v15, 16  ;;  %v4853_v15 = vld [vmem:[#allocation7 + $0xe8] sm:$0xff]  }
0x13f6   : > { %v3201_v17 = vpop.trf.xlu0 }
0x13f7   : > { %4514 = vmatmul.mubr.msk.bf16.vlgmr.msra.gmra.mxu0 %vm923_vm3, %v3201_v17  ;;  %v4855_v17 = vld [vmem:[#allocation7 + $0xe0] sm:$0xff]  }
0x13f8   : > { %3556 = vmatprep.mubr.bf16.mxu0 %v5086_v29  ;;  %3525 = vmatpush1.bf16.msra.mxu0 %v4801_v30 }
0x13f9   : > { %3526 = vmatprep.subr.bf16.mxu0 %v4809_v32 }
0x13fc   : > { %3527 = vmatpush1.bf16.msra.mxu0 %v4807_v34 }
0x140c   : > { %v3114_v19 = vpop.f32.mrf.mxu0 }
0x140d   : > { %v3120_v20 = vadd.f32 %v3114_v19, %v2927_v44  ;;  %v4815_v44 = vld [vmem:[#allocation5 + $0x1a4] ss:$16 sps:$4 sm:$0xff]  }
0x140e   : > { %v4503_v21 = vpop.f32.mrf.mxu0  ;;  %3528 = vmatprep.subr.bf16.mxu0 %v4815_v44  ;;  %v4856_v19 = vld [vmem:[#allocation7 + $0xa0] sm:$0xff]  }
0x140f   : > { %3529 = vmatpush1.bf16.msra.mxu0 %v4813_v46  ;;  %v4858_v21 = vld [vmem:[#allocation7 + $0x98] sm:$0xff]  }
0x1410   : > { %v3117_v22 = vpop.f32.mrf.mxu0  ;;  %3530 = vmatprep.subr.bf16.mxu0 %v4821_v48 }
0x1411   : > { %v4859_v22 = vld [vmem:[#allocation7 + $0xd0] sm:$0xff]  }
0x1412   : > { %v4504_v23 = vpop.f32.mrf.mxu0 }
0x1413   : > { %3531 = vmatpush1.bf16.msra.mxu0 %v4819_v50  ;;  %v4860_v23 = vld [vmem:[#allocation7 + $0x90] sm:$0xff]  }
0x1414   : > { %3532 = vmatprep.subr.bf16.mxu0 %v4827_v52 }
0x1417   : > { %3533 = vmatpush1.bf16.msra.mxu0 %v4825_v53 }
0x1418   : > { %3534 = vmatprep.subr.bf16.mxu0 %v4833_v54 }
0x141b   : > { %3535 = vmatpush1.bf16.msra.mxu0 %v4831_v56 }
0x141c   : > { %3536 = vmatprep.subr.bf16.mxu0 %v4839_v58 }
0x141f   : > { %3537 = vmatpush1.bf16.msra.mxu0 %v4837_v60 }
0x1420   : > { %3538 = vmatprep.subr.bf16.mxu0 %v4845_v62 }
0x1423   : > { %3539 = vmatpush1.bf16.msra.mxu0 %v4843_v0 }
0x1424   : > { %4303 = vmatprep.subr.bf16.mxu0 %v4849_v10 }
0x14b7   : > { %v3251_v25 = vpop.f32.mrf.mxu0 }
0x14b8   : > { %v3257_v26 = vpack.c.bf16 %v3251_v25, %v3251_v25  ;;  %v4862_v25 = vld [vmem:[#allocation7 + $0x88] sm:$0xff]  }
0x14b9   : > { %v4515_v27 = vpop.f32.mrf.mxu0 }
0x14ba   : > { %4522 = vmatmul.mubr.msk.bf16.vlgmr.msra.gmra.mxu1 %vm869_vm1, %v3257_v26  ;;  %v4863_v26 = vld [vmem:[#allocation7 + $0xc0] sm:$0xff]  }
0x14bb   : > { %v3254_v35 = vpop.f32.mrf.mxu0  ;;  %3597 = vmatprep.mubr.bf16.mxu1 %v5086_v29  ;;  %3566 = vmatpush1.bf16.msra.mxu1 %v4804_v9  ;;  %v4864_v27 = vld [vmem:[#allocation7 + $0x80] sm:$0xff]  }
0x14bc   : > { %3567 = vmatprep.subr.bf16.mxu1 %v4812_v33 }
0x14bd   : > { %v4516_v28 = vpop.f32.mrf.mxu0 }
0x14bf   : > { %3568 = vmatpush1.bf16.msra.mxu1 %v4810_v36 }
0x14c0   : > { %3569 = vmatprep.subr.bf16.mxu1 %v4818_v45 }
0x14c3   : > { %3570 = vmatpush1.bf16.msra.mxu1 %v4816_v47 }
0x14c4   : > { %3571 = vmatprep.subr.bf16.mxu1 %v4824_v49 }
0x14c7   : > { %3572 = vmatpush1.bf16.msra.mxu1 %v4822_v51  ;;  %v4928_v51 = vld [vmem:[%s5277_s22] sm:$0xff] }
0x14c8   : > { %3573 = vmatprep.subr.bf16.mxu1 %v4830_v11  ;;  %v3822_v52 = vsel %vm3821_vm4, %v4928_v51, 0.0 }
0x14c9   : > { %v3823_v11 = vrot.slane %v3822_v52, 4 }
0x14cb   : > { %3574 = vmatpush1.bf16.msra.mxu1 %v4828_v41  ;;  %v3824_v53 = vadd.f32 %v3823_v11, %v3822_v52 }
0x14cc   : > { %3575 = vmatprep.subr.bf16.mxu1 %v4836_v55 }
0x14cd   : > { %v3825_v41 = vrot.slane %v3824_v53, 2 }
0x14cf   : > { %3576 = vmatpush1.bf16.msra.mxu1 %v4834_v57  ;;  %v3826_v54 = vadd.f32 %v3825_v41, %v3824_v53 }
0x14d0   : > { %3577 = vmatprep.subr.bf16.mxu1 %v4842_v59 }
0x14d1   : > { %v3827_v55 = vrot.slane %v3826_v54, 1 }
0x14d3   : > { %3578 = vmatpush1.bf16.msra.mxu1 %v4840_v61  ;;  %v3828_v56 = vadd.f32 %v3827_v55, %v3826_v54 }
0x14d4   : > { %3579 = vmatprep.subr.bf16.mxu1 %v4848_v63 }
0x14d5   : > { %v3829_v57 = vmax.f32 %v3828_v56, 1e-09 }
0x14d7   : > { %3580 = vmatpush1.bf16.msra.mxu1 %v4846_v1 }
0x157a   : > { %v3307_v37 = vpop.f32.mrf.mxu1 }
0x157b   : > { %v5570_v38 = vadd.f32 %v3307_v37, %v3120_v20  ;;  %v4857_v20 = vld [vmem:[#allocation7 + $0xd8] sm:$0xff]  }
0x157c   : > { %v4523_v29 = vpop.f32.mrf.mxu1 }
0x157d   : > { %v3316_v39 = vmul.f32 %v5570_v38, %v5570_v38 }
0x157e   : > { %v3310_v40 = vpop.f32.mrf.mxu1 }
0x157f   : > { %3317 = vadd.xlane.f32.xlu1 %v3316_v39 }
0x1580   : > { %v4524_v42 = vpop.f32.mrf.mxu1 }
0x1590   : > { %3832 = vperm.xlu1 %4608, %v3829_v57  }
0x1608   : > { %v3318_v2 = vpop.xlane.xlu1 %3317 }
0x1609   : > { %v3319_v43 = vmul.f32 0.0078125, %v3318_v2 }
0x160b   : > { %v3320_v3 = vadd.f32 1e-06, %v3319_v43 }
0x160d   : > { %4911 = vrsqrt.f32 %v3320_v3 }
0x161a   : > { %v4912_v5 = vpop.eup %4911 }
0x161b   : > { %v3322_v7 = vmul.f32 %v4912_v5, %v5570_v38  ;;  %v4203_v5 = vld [vmem:[%s5623_s6] ss:$0 sm:$0xff] }
0x161d   : > { %v3329_v8 = vmul.f32 %v4152_v6, %v3322_v7  ;;  %v3833_v6 = vpop.permute.xlu1 %3832 }
0x161f   : > { %v3330_v18 = vpack.c.bf16 %v3329_v8, %v3329_v8 }
0x1621   : > { %3557 = vmatmul.mubr.bf16.vlgmr.msra.gmra.mxu0 %v3330_v18  ;;  %3598 = vmatmul.mubr.bf16.vlgmr.msra.gmra.mxu1 %v3330_v18 }
0x1622   : > { %4304 = vmatpush3.bf16.msra.mxu0 %v4850_v12 }
0x1623   : > { %4305 = vmatprep.subr.bf16.mxu0 %v4851_v13 }
0x1626   : > { %4306 = vmatpush3.bf16.msra.mxu0 %v4852_v14 }
0x1627   : > { %4307 = vmatprep.subr.bf16.mxu0 %v4853_v15 }
0x162a   : > { %4308 = vmatpush3.bf16.msra.mxu0 %v4854_v16 }
0x162b   : > { %4309 = vmatprep.subr.bf16.mxu0 %v4855_v17 }
0x162e   : > { %4310 = vmatpush3.bf16.msra.mxu0 %v4856_v19 }
0x162f   : > { %4311 = vmatprep.subr.bf16.mxu0 %v4857_v20 }
0x1632   : > { %4312 = vmatpush3.bf16.msra.mxu0 %v4858_v21 }
0x1633   : > { %4313 = vmatprep.subr.bf16.mxu0 %v4859_v22 }
0x1636   : > { %4314 = vmatpush3.bf16.msra.mxu0 %v4860_v23 }
0x1637   : > { %4315 = vmatprep.subr.bf16.mxu0 %v4861_v24 }
0x163a   : > { %4316 = vmatpush3.bf16.msra.mxu0 %v4862_v25 }
0x163b   : > { %4317 = vmatprep.subr.bf16.mxu0 %v4863_v26 }
0x163e   : > { %4318 = vmatpush3.bf16.msra.mxu0 %v4864_v27 }
0x16e1   : > { %v3558_v35 = vpop.f32.mrf.mxu0  ;;  %v3599_v28 = vpop.f32.mrf.mxu1 }
0x16e2   : > { %v4185_v30 = vmul.f32 -1.442695, %v3558_v35 }
0x16e3   : > { %v3560_v4 = vpop.f32.mrf.mxu0  ;;  %v3601_v9 = vpop.f32.mrf.mxu1 }
0x16e4   : > { %4913 = vpow2.f32 %v4185_v30  ;;  %v4186_v31 = vmul.f32 -1.442695, %v3560_v4 }
0x16e5   : > { %v3562_v32 = vpop.f32.mrf.mxu0  ;;  %v3603_v33 = vpop.f32.mrf.mxu1 }
0x16e6   : > { %4915 = vpow2.f32 %v4186_v31 }
0x16e7   : > { %v3563_v34 = vpop.f32.mrf.mxu0  ;;  %v3604_v36 = vpop.f32.mrf.mxu1 }
0x16f1   : > { %v4914_v37 = vpop.eup %4913 }
0x16f2   : > { %v3612_v29 = vadd.f32 1.0, %v4914_v37 }
0x16f3   : > { %v4916_v39 = vpop.eup %4915 }
0x16f4   : > { %4917 = vrcp.f32 %v3612_v29  ;;  %v3613_v40 = vadd.f32 1.0, %v4916_v39 }
0x16f6   : > { %4919 = vrcp.f32 %v3613_v40 }
0x1701   : > { %v4918_v42 = vpop.eup %4917 }
0x1702   : > { %v3618_v44 = vmul.f32 %v4918_v42, %v3558_v35 }
0x1703   : > { %v4920_v45 = vpop.eup %4919 }
0x1704   : > { %v3619_v46 = vmul.f32 %v4920_v45, %v3560_v4  ;;  %v3620_v47 = vmul.f32 %v3618_v44, %v3599_v28 }
0x1706   : > { %v3621_v48 = vmul.f32 %v3619_v46, %v3601_v9  ;;  %v3622_v50 = vpack.c.bf16 %v3620_v47, %v3620_v47 }
0x1708   : > { %v3623_v49 = vpack.c.bf16 %v3621_v48, %v3621_v48 }
0x170a   : > { %3785 = vmatprep.mubr.bf16.mxu0 %v3623_v49 }
0x170b   : > { %3786 = vmatmul.mubr.bf16.vlgmr.msra.gmra.mxu0 %v3622_v50 }
0x17cb   : > { %v4319_v58 = vpop.f32.mrf.mxu0 }
0x17cd   : > { %v4320_v59 = vpop.f32.mrf.mxu0 }
0x17ce   : > { %v4321_v60 = vadd.f32 %v4320_v59, %v4319_v58 }
0x17cf   : > { %v4322_v61 = vpop.f32.mrf.mxu0 }
0x17d0   : > { %v3793_v62 = vadd.f32 %v4321_v60, %v5570_v38 }
0x17d1   : > { %v4323_v63 = vpop.f32.mrf.mxu0 }
0x17d2   : > { %v3795_v0 = vmul.f32 %v3793_v62, %v3793_v62 }
0x17d4   : > { %3796 = vadd.xlane.f32.xlu0 %v3795_v0 }
0x17ea   : > { %3811 = vperm.xlu0 %4607, %v4928_v51  }
0x185d   : > { %v3797_v1 = vpop.xlane.xlu0 %3796 }
0x185e   : > { %v3798_v2 = vmul.f32 0.0078125, %v3797_v1 }
0x1860   : > { %v3799_v43 = vadd.f32 1e-06, %v3798_v2 }
0x1862   : > { %4921 = vrsqrt.f32 %v3799_v43 }
0x1863   : > { %4923 = vrcp.f32 %v3833_v6 }
0x1865   : > { %v3812_v38 = vpop.permute.xlu0 %3811 }
0x186f   : > { %v4922_v3 = vpop.eup %4921 }
0x1870   : > { %v3801_v7 = vmul.f32 %v4922_v3, %v3793_v62  ;;  %v4924_v16 = vpop.eup %4923 }
0x1872   : > { %v3808_v8 = vmul.f32 %v4203_v5, %v3801_v7 }
0x1874   : > { %v3814_v18 = vmul.f32 %v3812_v38, %v3808_v8 }
0x1876   : > { %v3815_v10 = vrot.slane %v3814_v18, 4 }
0x1878   : > { %v3816_v12 = vadd.f32 %v3815_v10, %v3814_v18 }
0x187a   : > { %v3817_v13 = vrot.slane %v3816_v12, 2 }
0x187c   : > { %v3818_v14 = vadd.f32 %v3817_v13, %v3816_v12 }
0x187e   : > { %v3819_v15 = vrot.slane %v3818_v14, 1 }
0x1880   : > { %v3820_v17 = vadd.f32 %v3819_v15, %v3818_v14 }
0x1882   : > { %v3836_v19 = vmul.f32 %v4924_v16, %v3820_v17 }
0x1884   : > { %3837 = vst [vmem:[%s433_s25] sm:$0x1] %v3836_v19 }
0x1885   : > { %5020 = shalt.err (!%p5017_p11)
}
0x1886   : > { %s5021_s22 = scalar_lea.hbm %s3849_s23, 16  ;;  %s5025_s24 = scalar_lea.hbm %s5628_s11, 32 }
0x1887   : > { %p5022_p0 = scmp.ne.s32.totalorder %s3849_s23, %s5021_s22  ;;  %p5026_p3 = scmp.lt.s32.totalorder %s3849_s23, %s5628_s11 }
0x1888   : > { %p5027_p2 = scmp.lt.s32.totalorder %s5025_s24, %s5021_s22 }
0x1889   : > { %p5023_p1 = pnand %p5022_p0, %p5191_p5 }
0x188a   : > { %p5028_p4 = por %p5027_p2, %p5026_p3 }
0x188b   : > { %p5024_p13 = pneg %p5023_p1 }
0x188d   : > { %p5029_p10 = pnand %p5028_p4, %p5024_p13 }
0x188f   : > { %5032 = shalt.err (!%p5029_p10)
}
0x1890   : > { %4537 = dma.vmem_to_hbm [thread:$0]  (%p5191_p5), %s3852_s30, 16, %s3849_s23, %s3839_s26  }
0x1891 PF: > { %p4559_p12 = scmp.ge.s32.totalorder %s5075_s20, 2  ;;  %s3863_s15 = sand.u32 1, %s5063_s17  }
0x1892   : > { %p5644_p7 = scmp.ne.s32.totalorder %s5637_s28, 0  ;;  %s3864_s14 = scalar_lea.sflag [#allocation4], %s3863_s15 }
0x1894   : > { %p4550_p6 = pnand %p4559_p12, %p5644_p7 }
0x1896   : > { %p4551_p9 = pneg %p4550_p6 }
0x1898   : > { %5058 = dma.done.wait (%p4551_p9), %s3864_s14, 16  }
0x1899   : > { %5060 = vsyncadd (%p4551_p9), %s3864_s14, 4294967280  ;;  %s5645_s20 = sld [smem:[#allocation13_spill]]  ;;  %s5648_s17 = smov %s5067_s18 }
0x189a   : > { %s5646_s29 = sld [smem:[#allocation12_spill]] }
0x189b   : > { %s5647_s19 = sld [smem:[#allocation14_spill]] }
0x189f   : > { %p23_p8 = scmp.ge.s32.totalorder %s5645_s20, 4  }
0x18a0   : > { %s5649_s18 = smov %s5646_s29 }
0x18a1   :  { %25 = sbr.rel (!%p23_p8) target bundleno = 5 (0x5), region = 121 }
0x18a6   :  { %3868 = vsyncpa [#allocation3], 1 }
0x18a7   :  { %3870 = vsyncpa [#allocation3 + $0x1], 1 }
0x18a8   :  { %3871 = vsyncpa [#allocation6], 1 }
0x18a9   :  { %3872 = vsyncpa [#allocation4], 1 }
0x18aa   :  { %3874 = vsyncpa [#allocation4 + $0x1], 1 }

</bundles_post_ra>
